<compile_context>
chip_gen: v7x
topology: tpu7x:2x2x1
jax: 0.10.0
libtpu: 0.0.40
codegen_flags: <defaults>
</compile_context>

<pallas_src>
import jax
import jax.numpy as jnp
from jax.experimental import pallas as pl
from jax.experimental.pallas import tpu as pltpu

_EPS = 1e-5


# ---------------------------------------------------------------------------
# Fused decoder_block kernel
# ---------------------------------------------------------------------------
def _decoder_block_kernel(xdup_ref, skip_ref, wup_ref, bup_ref,
                          w1_ref, b1_ref, g1_ref, be1_ref,
                          w2_ref, b2_ref, g2_ref, be2_ref,
                          projm_ref,
                          o_ref, cat_pad, h1_pad):
    # xdup_ref : (N*2H, 2*W*Cin)      phase-duplicated low-res rows
    # skip_ref : (N, 2H, 2W*C)        skip connection, lane-dense
    # wup_ref  : (2*W*Cin, 2W*C)      ConvTranspose2d(k2,s2) as block-diag matmul
    # w1_ref   : (3, 2*(2W*C), 2W*C)  conv1 banded weights (one per dy), concat folded in
    # w2_ref   : (3, 2W*C, 2W*C)      conv2 banded weights (one per dy)
    # b*/g*/be*: (1, 2W*C)            per-lane (channel-tiled) bias / gamma / beta rows
    # projm_ref: (2W*C, 2W*C)         channel-mean projector (already divided by N*2H*2W)
    # o_ref    : (N*2H, 2W*C)         lane-dense output slab
    # cat_pad  : (N, 2H+2, 2*(2W*C))  VMEM scratch: [up | skip] with 1 zero halo row
    # h1_pad   : (N, 2H+2, 2W*C)      VMEM scratch: conv1+BN+ReLU with 1 zero halo row
    N, H2p, _ = cat_pad.shape
    H2 = H2p - 2
    lanes = o_ref.shape[-1]
    M = N * H2

    projm = projm_ref[...]

    def bn_relu(h, g_row, be_row):
        # per-channel batch statistics over all rows and all X positions (lane k holds
        # channel k % C, so a matmul with the projector gives the broadcast channel mean)
        mean_l = jnp.dot(jnp.sum(h, axis=0, keepdims=True), projm,
                         preferred_element_type=jnp.float32)            # (1, lanes)
        d = h - mean_l
        var_l = jnp.dot(jnp.sum(d * d, axis=0, keepdims=True), projm,
                        preferred_element_type=jnp.float32)             # (1, lanes)
        return jnp.maximum(d * (jax.lax.rsqrt(var_l + _EPS) * g_row) + be_row, 0.0)

    # ---- ConvTranspose2d(k=2, s=2): one lane-dense MXU matmul. Output rows come out
    #      already in interleaved (n, 2i+a) order thanks to the phase-duplicated input.
    up = jnp.dot(xdup_ref[...], wup_ref[...],
                 preferred_element_type=jnp.float32) + bup_ref[...]     # (M, lanes)

    # ---- torch.cat([up, skip], channel axis): block layout [up | skip] along lanes
    #      of a zero-initialized, row-haloed VMEM scratch (concat folded into w1 bands).
    cat_pad[...] = jnp.zeros(cat_pad.shape, cat_pad.dtype)
    cat_pad[:, 1:1 + H2, 0:lanes] = up.reshape(N, H2, lanes)
    cat_pad[:, 1:1 + H2, lanes:2 * lanes] = skip_ref[...]

    # ---- conv1 (3x3, pad=1): 3 banded matmuls (one per dy), then BN1 + ReLU ----
    h1 = jnp.zeros((M, lanes), jnp.float32)
    for dy in range(3):
        src = cat_pad[:, dy:dy + H2, :].reshape(M, 2 * lanes)
        h1 = h1 + jnp.dot(src, w1_ref[dy], preferred_element_type=jnp.float32)
    h1 = bn_relu(h1 + b1_ref[...], g1_ref[...], be1_ref[...])

    # ---- conv2 (3x3, pad=1): 3 banded matmuls, then BN2 + ReLU ----
    h1_pad[...] = jnp.zeros(h1_pad.shape, h1_pad.dtype)
    h1_pad[:, 1:1 + H2, :] = h1.reshape(N, H2, lanes)

    h2 = jnp.zeros((M, lanes), jnp.float32)
    for dy in range(3):
        src = h1_pad[:, dy:dy + H2, :].reshape(M, lanes)
        h2 = h2 + jnp.dot(src, w2_ref[dy], preferred_element_type=jnp.float32)
    h2 = bn_relu(h2 + b2_ref[...], g2_ref[...], be2_ref[...])

    # ---- lane-dense, unmasked output store ----
    o_ref[...] = h2.astype(o_ref.dtype)


# ---------------------------------------------------------------------------
# Wrapper-side structured-weight builders (plain XLA, run once per call)
# ---------------------------------------------------------------------------
def _upsample_weight(w_up, W, W2):
    # w_up: (Cin, Cout, 2, 2).  Returns (2*W*Cin, W2*Cout): rows = (phase a, j, ci),
    # cols = (X, co); nonzero only at X = 2*j + b with value w_up[ci, co, a, b].
    Cin, Cout = w_up.shape[0], w_up.shape[1]
    j = jnp.arange(W)
    phases = []
    for a in range(2):
        blk = jnp.zeros((W, Cin, W2, Cout), jnp.float32)
        for b in range(2):
            blk = blk.at[j, :, 2 * j + b, :].set(w_up[:, :, a, b])
        phases.append(blk.reshape(W * Cin, W2 * Cout))
    return jnp.concatenate(phases, axis=0)


def _band_weight(w_part, dy, W2):
    # w_part: (Cout, Cp, 3, 3) OIHW conv-weight slice.  Returns (W2*Cp, W2*Cout):
    # banded matrix encoding the dx taps of a 3x3 conv with padding=1 on the lane axis.
    Cout, Cp = w_part.shape[0], w_part.shape[1]
    m = jnp.zeros((W2, Cp, W2, Cout), jnp.float32)
    xo = jnp.arange(W2)
    for dx in range(3):
        xi = xo + dx - 1
        valid = (xi >= 0) & (xi < W2)
        xi_c = jnp.clip(xi, 0, W2 - 1)
        tap = jnp.transpose(w_part[:, :, dy, dx])            # (Cp, Cout)
        val = jnp.where(valid[:, None, None], tap[None, :, :], 0.0)
        m = m.at[xi_c, :, xo, :].add(val)
    return m.reshape(W2 * Cp, W2 * Cout)


# ---------------------------------------------------------------------------
# decoder_block forward (NCHW in / NCHW out, matching the PyTorch module)
# ---------------------------------------------------------------------------
def decoder_block_apply(params, inputs_nchw, skip_nchw):
    N, Cin, H, W = inputs_nchw.shape
    Cout = params["up_w"].shape[1]
    H2, W2 = 2 * H, 2 * W
    lanes = W2 * Cout
    f32 = jnp.float32

    # NCHW -> lane-dense slabs (interface transposes only)
    x = jnp.transpose(inputs_nchw, (0, 2, 3, 1)).astype(f32)         # (N, H, W, Cin)
    skip = jnp.transpose(skip_nchw, (0, 2, 3, 1)).astype(f32)        # (N, 2H, 2W, Cout)
    skip_slab = skip.reshape(N, H2, lanes)

    # phase-duplicated rows: row (n, 2i+a) holds x[n, i] in half `a`, zeros otherwise,
    # so the ConvTranspose matmul output rows land directly in interleaved Y order.
    xr = x.reshape(N, H, 1, W * Cin)
    zr = jnp.zeros_like(xr)
    x_dup = jnp.concatenate([jnp.concatenate([xr, zr], axis=-1),
                             jnp.concatenate([zr, xr], axis=-1)], axis=2)
    x_dup = x_dup.reshape(N * H2, 2 * W * Cin)

    # structured matmul weights
    w_up_big = _upsample_weight(params["up_w"].astype(f32), W, W2)   # (2*W*Cin, lanes)
    w1 = params["c1_w"].astype(f32)                                   # (Cout, 2*Cout, 3, 3)
    w1_bands = jnp.stack([jnp.concatenate([_band_weight(w1[:, :Cout], dy, W2),
                                           _band_weight(w1[:, Cout:], dy, W2)], axis=0)
                          for dy in range(3)])                        # (3, 2*lanes, lanes)
    w2 = params["c2_w"].astype(f32)                                   # (Cout, Cout, 3, 3)
    w2_bands = jnp.stack([_band_weight(w2, dy, W2) for dy in range(3)])  # (3, lanes, lanes)

    def lane_row(v):
        return jnp.tile(v.astype(f32), W2).reshape(1, lanes)

    bup_row = lane_row(params["up_b"])
    b1_row, g1_row, be1_row = lane_row(params["c1_b"]), lane_row(params["bn1_g"]), lane_row(params["bn1_b"])
    b2_row, g2_row, be2_row = lane_row(params["c2_b"]), lane_row(params["bn2_g"]), lane_row(params["bn2_b"])

    # channel-mean projector: (row-sum of h) @ projm == per-channel mean broadcast back
    # to every (X, channel) lane (lane k holds channel k % Cout).
    sel = jnp.tile(jnp.eye(Cout, dtype=f32), (W2, 1))                 # (lanes, Cout)
    projm = (sel @ sel.T) / float(N * H2 * W2)                        # (lanes, lanes)

    def full_spec(shape):
        rank = len(shape)
        return pl.BlockSpec(shape, lambda i, _r=rank: (0,) * _r)

    operands = (x_dup, skip_slab, w_up_big, bup_row,
                w1_bands, b1_row, g1_row, be1_row,
                w2_bands, b2_row, g2_row, be2_row, projm)

    out_slab = pl.pallas_call(
        _decoder_block_kernel,
        out_shape=jax.ShapeDtypeStruct((N * H2, lanes), f32),
        grid=(1,),
        in_specs=[full_spec(op.shape) for op in operands],
        out_specs=full_spec((N * H2, lanes)),
        scratch_shapes=[pltpu.VMEM((N, H2 + 2, 2 * lanes), f32),
                        pltpu.VMEM((N, H2 + 2, lanes), f32)],
        compiler_params=pltpu.CompilerParams(
            dimension_semantics=("arbitrary",)),
    )(*operands)

    # (N*2H, 2W*C) -> (N, 2H, 2W, C) (metadata reshape) -> NCHW
    out = out_slab.reshape(N, H2, W2, Cout)
    return jnp.transpose(out, (0, 3, 1, 2))


if __name__ == "__main__":
    key = jax.random.PRNGKey(0)
    in_c, out_c = 4, 4
    N, H, W = 2, 16, 16
    ks = jax.random.split(key, 12)

    params = {
        # ConvTranspose2d weight: (in_c, out_c, 2, 2)
        "up_w": 0.1 * jax.random.normal(ks[0], (in_c, out_c, 2, 2), jnp.float32),
        "up_b": 0.1 * jax.random.normal(ks[1], (out_c,), jnp.float32),
        # conv1: Conv2d(2*out_c, out_c, 3) weight: (out_c, 2*out_c, 3, 3)
        "c1_w": 0.1 * jax.random.normal(ks[2], (out_c, 2 * out_c, 3, 3), jnp.float32),
        "c1_b": 0.1 * jax.random.normal(ks[3], (out_c,), jnp.float32),
        "bn1_g": 1.0 + 0.1 * jax.random.normal(ks[4], (out_c,), jnp.float32),
        "bn1_b": 0.1 * jax.random.normal(ks[5], (out_c,), jnp.float32),
        # conv2: Conv2d(out_c, out_c, 3) weight: (out_c, out_c, 3, 3)
        "c2_w": 0.1 * jax.random.normal(ks[6], (out_c, out_c, 3, 3), jnp.float32),
        "c2_b": 0.1 * jax.random.normal(ks[7], (out_c,), jnp.float32),
        "bn2_g": 1.0 + 0.1 * jax.random.normal(ks[8], (out_c,), jnp.float32),
        "bn2_b": 0.1 * jax.random.normal(ks[9], (out_c,), jnp.float32),
    }

    inputs = jax.random.normal(ks[10], (N, in_c, H, W), jnp.float32)          # NCHW
    skip = jax.random.normal(ks[11], (N, out_c, 2 * H, 2 * W), jnp.float32)   # NCHW

    out = jax.jit(decoder_block_apply)(params, inputs, skip)
    jax.block_until_ready(out)
    assert out.shape == (N, out_c, 2 * H, 2 * W), out.shape
    assert jnp.all(jnp.isfinite(out))
    print("KERNEL_OK")
</pallas_src>

<mosaic_0001>
module attributes {stable_mosaic.version = 11 : i64} {
  func.func @_decoder_block_kernel(%arg0: i32, %arg1: memref<64x128xf32, #tpu.memory_space<vmem>>, %arg2: memref<2x32x128xf32, #tpu.memory_space<vmem>>, %arg3: memref<128x128xf32, #tpu.memory_space<vmem>>, %arg4: memref<1x128xf32, #tpu.memory_space<vmem>>, %arg5: memref<3x256x128xf32, #tpu.memory_space<vmem>>, %arg6: memref<1x128xf32, #tpu.memory_space<vmem>>, %arg7: memref<1x128xf32, #tpu.memory_space<vmem>>, %arg8: memref<1x128xf32, #tpu.memory_space<vmem>>, %arg9: memref<3x128x128xf32, #tpu.memory_space<vmem>>, %arg10: memref<1x128xf32, #tpu.memory_space<vmem>>, %arg11: memref<1x128xf32, #tpu.memory_space<vmem>>, %arg12: memref<1x128xf32, #tpu.memory_space<vmem>>, %arg13: memref<128x128xf32, #tpu.memory_space<vmem>>, %arg14: memref<64x128xf32, #tpu.memory_space<vmem>>, %arg15: memref<2x34x256xf32, #tpu.memory_space<vmem>>, %arg16: memref<2x34x128xf32, #tpu.memory_space<vmem>>) attributes {dimension_semantics = [#tpu.dimension_semantics<arbitrary>], iteration_bounds = array<i64: 1>, scalar_prefetch = 0 : i64, scratch_operands = 2 : i64, tpu.core_type = #tpu.core_type<tc>, window_params = [{pipeline_mode = #tpu.pipeline_mode<synchronous>, transform_indices = @transform_0, window_bounds = array<i64: 64, 128>}, {pipeline_mode = #tpu.pipeline_mode<synchronous>, transform_indices = @transform_1, window_bounds = array<i64: 2, 32, 128>}, {pipeline_mode = #tpu.pipeline_mode<synchronous>, transform_indices = @transform_2, window_bounds = array<i64: 128, 128>}, {pipeline_mode = #tpu.pipeline_mode<synchronous>, transform_indices = @transform_3, window_bounds = array<i64: 1, 128>}, {pipeline_mode = #tpu.pipeline_mode<synchronous>, transform_indices = @transform_4, window_bounds = array<i64: 3, 256, 128>}, {pipeline_mode = #tpu.pipeline_mode<synchronous>, transform_indices = @transform_5, window_bounds = array<i64: 1, 128>}, {pipeline_mode = #tpu.pipeline_mode<synchronous>, transform_indices = @transform_6, window_bounds = array<i64: 1, 128>}, {pipeline_mode = #tpu.pipeline_mode<synchronous>, transform_indices = @transform_7, window_bounds = array<i64: 1, 128>}, {pipeline_mode = #tpu.pipeline_mode<synchronous>, transform_indices = @transform_8, window_bounds = array<i64: 3, 128, 128>}, {pipeline_mode = #tpu.pipeline_mode<synchronous>, transform_indices = @transform_9, window_bounds = array<i64: 1, 128>}, {pipeline_mode = #tpu.pipeline_mode<synchronous>, transform_indices = @transform_10, window_bounds = array<i64: 1, 128>}, {pipeline_mode = #tpu.pipeline_mode<synchronous>, transform_indices = @transform_11, window_bounds = array<i64: 1, 128>}, {pipeline_mode = #tpu.pipeline_mode<synchronous>, transform_indices = @transform_12, window_bounds = array<i64: 128, 128>}, {pipeline_mode = #tpu.pipeline_mode<synchronous>, transform_indices = @transform_13, window_bounds = array<i64: 64, 128>}]} {
    %c0 = arith.constant 0 : index
    %c0_0 = arith.constant 0 : index
    %0 = vector.load %arg13[%c0, %c0_0] : memref<128x128xf32, #tpu.memory_space<vmem>>, vector<128x128xf32>
    %c0_1 = arith.constant 0 : index
    %c0_2 = arith.constant 0 : index
    %1 = vector.load %arg1[%c0_1, %c0_2] : memref<64x128xf32, #tpu.memory_space<vmem>>, vector<64x128xf32>
    %c0_3 = arith.constant 0 : index
    %c0_4 = arith.constant 0 : index
    %2 = vector.load %arg3[%c0_3, %c0_4] : memref<128x128xf32, #tpu.memory_space<vmem>>, vector<128x128xf32>
    %cst = arith.constant dense<0.000000e+00> : vector<64x128xf32>
    %3 = tpu.matmul %1, %2, %cst {dimension_numbers = #tpu.dot_dimension_numbers<[1], [0], [0], [1], [0, 0, 1, 1], [], []>} : vector<64x128xf32>, vector<128x128xf32>, vector<64x128xf32> -> vector<64x128xf32>
    %c0_5 = arith.constant 0 : index
    %c0_6 = arith.constant 0 : index
    %4 = vector.load %arg4[%c0_5, %c0_6] : memref<1x128xf32, #tpu.memory_space<vmem>>, vector<1x128xf32>
    %5 = vector.broadcast %4 : vector<1x128xf32> to vector<64x128xf32>
    %6 = arith.addf %3, %5 : vector<64x128xf32>
    %cst_7 = arith.constant 0.000000e+00 : f32
    %7 = vector.broadcast %cst_7 : f32 to vector<2x34x256xf32>
    %c0_8 = arith.constant 0 : index
    %c0_9 = arith.constant 0 : index
    %c0_10 = arith.constant 0 : index
    %8 = vector.load %arg15[%c0_8, %c0_9, %c0_10] : memref<2x34x256xf32, #tpu.memory_space<vmem>>, vector<2x34x256xf32>
    tpu.vector_store %arg15[%c0_8, %c0_9, %c0_10], %7 {strides = array<i32>} : memref<2x34x256xf32, #tpu.memory_space<vmem>>, vector<2x34x256xf32>,
    %9 = vector.shape_cast %6 : vector<64x128xf32> to vector<2x32x128xf32>
    %c0_11 = arith.constant 0 : index
    %c1 = arith.constant 1 : index
    %c0_12 = arith.constant 0 : index
    %10 = vector.load %arg15[%c0_11, %c1, %c0_12] : memref<2x34x256xf32, #tpu.memory_space<vmem>>, vector<2x32x128xf32>
    tpu.vector_store %arg15[%c0_11, %c1, %c0_12], %9 {strides = array<i32>} : memref<2x34x256xf32, #tpu.memory_space<vmem>>, vector<2x32x128xf32>,
    %c0_13 = arith.constant 0 : index
    %c0_14 = arith.constant 0 : index
    %c0_15 = arith.constant 0 : index
    %11 = vector.load %arg2[%c0_13, %c0_14, %c0_15] : memref<2x32x128xf32, #tpu.memory_space<vmem>>, vector<2x32x128xf32>
    %c0_16 = arith.constant 0 : index
    %c1_17 = arith.constant 1 : index
    %c128 = arith.constant 128 : index
    %12 = vector.load %arg15[%c0_16, %c1_17, %c128] : memref<2x34x256xf32, #tpu.memory_space<vmem>>, vector<2x32x128xf32>
    tpu.vector_store %arg15[%c0_16, %c1_17, %c128], %11 {strides = array<i32>} : memref<2x34x256xf32, #tpu.memory_space<vmem>>, vector<2x32x128xf32>,
    %cst_18 = arith.constant 0.000000e+00 : f32
    %13 = vector.broadcast %cst_18 : f32 to vector<64x128xf32>
    %c0_19 = arith.constant 0 : index
    %c0_20 = arith.constant 0 : index
    %c0_21 = arith.constant 0 : index
    %14 = vector.load %arg15[%c0_19, %c0_20, %c0_21] : memref<2x34x256xf32, #tpu.memory_space<vmem>>, vector<2x32x256xf32>
    %15 = vector.shape_cast %14 : vector<2x32x256xf32> to vector<64x256xf32>
    %c0_22 = arith.constant 0 : index
    %c0_23 = arith.constant 0 : index
    %c0_24 = arith.constant 0 : index
    %16 = vector.load %arg5[%c0_22, %c0_23, %c0_24] : memref<3x256x128xf32, #tpu.memory_space<vmem>>, vector<1x256x128xf32>
    %17 = vector.shape_cast %16 : vector<1x256x128xf32> to vector<256x128xf32>
    %cst_25 = arith.constant dense<0.000000e+00> : vector<64x128xf32>
    %18 = tpu.matmul %15, %17, %cst_25 {dimension_numbers = #tpu.dot_dimension_numbers<[1], [0], [0], [1], [0, 0, 1, 1], [], []>} : vector<64x256xf32>, vector<256x128xf32>, vector<64x128xf32> -> vector<64x128xf32>
    %19 = arith.addf %13, %18 : vector<64x128xf32>
    %c0_26 = arith.constant 0 : index
    %c1_27 = arith.constant 1 : index
    %c0_28 = arith.constant 0 : index
    %20 = vector.load %arg15[%c0_26, %c1_27, %c0_28] : memref<2x34x256xf32, #tpu.memory_space<vmem>>, vector<2x32x256xf32>
    %21 = vector.shape_cast %20 : vector<2x32x256xf32> to vector<64x256xf32>
    %c1_29 = arith.constant 1 : index
    %c0_30 = arith.constant 0 : index
    %c0_31 = arith.constant 0 : index
    %22 = vector.load %arg5[%c1_29, %c0_30, %c0_31] : memref<3x256x128xf32, #tpu.memory_space<vmem>>, vector<1x256x128xf32>
    %23 = vector.shape_cast %22 : vector<1x256x128xf32> to vector<256x128xf32>
    %cst_32 = arith.constant dense<0.000000e+00> : vector<64x128xf32>
    %24 = tpu.matmul %21, %23, %cst_32 {dimension_numbers = #tpu.dot_dimension_numbers<[1], [0], [0], [1], [0, 0, 1, 1], [], []>} : vector<64x256xf32>, vector<256x128xf32>, vector<64x128xf32> -> vector<64x128xf32>
    %25 = arith.addf %19, %24 : vector<64x128xf32>
    %c0_33 = arith.constant 0 : index
    %c2 = arith.constant 2 : index
    %c0_34 = arith.constant 0 : index
    %26 = vector.load %arg15[%c0_33, %c2, %c0_34] : memref<2x34x256xf32, #tpu.memory_space<vmem>>, vector<2x32x256xf32>
    %27 = vector.shape_cast %26 : vector<2x32x256xf32> to vector<64x256xf32>
    %c2_35 = arith.constant 2 : index
    %c0_36 = arith.constant 0 : index
    %c0_37 = arith.constant 0 : index
    %28 = vector.load %arg5[%c2_35, %c0_36, %c0_37] : memref<3x256x128xf32, #tpu.memory_space<vmem>>, vector<1x256x128xf32>
    %29 = vector.shape_cast %28 : vector<1x256x128xf32> to vector<256x128xf32>
    %cst_38 = arith.constant dense<0.000000e+00> : vector<64x128xf32>
    %30 = tpu.matmul %27, %29, %cst_38 {dimension_numbers = #tpu.dot_dimension_numbers<[1], [0], [0], [1], [0, 0, 1, 1], [], []>} : vector<64x256xf32>, vector<256x128xf32>, vector<64x128xf32> -> vector<64x128xf32>
    %31 = arith.addf %25, %30 : vector<64x128xf32>
    %c0_39 = arith.constant 0 : index
    %c0_40 = arith.constant 0 : index
    %32 = vector.load %arg6[%c0_39, %c0_40] : memref<1x128xf32, #tpu.memory_space<vmem>>, vector<1x128xf32>
    %33 = vector.broadcast %32 : vector<1x128xf32> to vector<64x128xf32>
    %34 = arith.addf %31, %33 : vector<64x128xf32>
    %c0_41 = arith.constant 0 : index
    %c0_42 = arith.constant 0 : index
    %35 = vector.load %arg7[%c0_41, %c0_42] : memref<1x128xf32, #tpu.memory_space<vmem>>, vector<1x128xf32>
    %c0_43 = arith.constant 0 : index
    %c0_44 = arith.constant 0 : index
    %36 = vector.load %arg8[%c0_43, %c0_44] : memref<1x128xf32, #tpu.memory_space<vmem>>, vector<1x128xf32>
    %cst_45 = arith.constant dense<0.000000e+00> : vector<128xf32>
    %37 = vector.multi_reduction <add>, %34, %cst_45 [0] : vector<64x128xf32> to vector<128xf32>
    %38 = vector.shape_cast %37 : vector<128xf32> to vector<1x128xf32>
    %cst_46 = arith.constant dense<0.000000e+00> : vector<1x128xf32>
    %39 = tpu.matmul %38, %0, %cst_46 {dimension_numbers = #tpu.dot_dimension_numbers<[1], [0], [0], [1], [0, 0, 1, 1], [], []>} : vector<1x128xf32>, vector<128x128xf32>, vector<1x128xf32> -> vector<1x128xf32>
    %40 = vector.broadcast %39 : vector<1x128xf32> to vector<64x128xf32>
    %41 = arith.subf %34, %40 : vector<64x128xf32>
    %42 = arith.mulf %41, %41 : vector<64x128xf32>
    %cst_47 = arith.constant dense<0.000000e+00> : vector<128xf32>
    %43 = vector.multi_reduction <add>, %42, %cst_47 [0] : vector<64x128xf32> to vector<128xf32>
    %44 = vector.shape_cast %43 : vector<128xf32> to vector<1x128xf32>
    %cst_48 = arith.constant dense<0.000000e+00> : vector<1x128xf32>
    %45 = tpu.matmul %44, %0, %cst_48 {dimension_numbers = #tpu.dot_dimension_numbers<[1], [0], [0], [1], [0, 0, 1, 1], [], []>} : vector<1x128xf32>, vector<128x128xf32>, vector<1x128xf32> -> vector<1x128xf32>
    %cst_49 = arith.constant 9.99999974E-6 : f32
    %46 = vector.broadcast %cst_49 : f32 to vector<1x128xf32>
    %47 = arith.addf %45, %46 : vector<1x128xf32>
    %48 = math.rsqrt %47 : vector<1x128xf32>
    %49 = arith.mulf %48, %35 : vector<1x128xf32>
    %50 = vector.broadcast %49 : vector<1x128xf32> to vector<64x128xf32>
    %51 = arith.mulf %41, %50 : vector<64x128xf32>
    %52 = vector.broadcast %36 : vector<1x128xf32> to vector<64x128xf32>
    %53 = arith.addf %51, %52 : vector<64x128xf32>
    %cst_50 = arith.constant 0.000000e+00 : f32
    %54 = vector.broadcast %cst_50 : f32 to vector<64x128xf32>
    %55 = arith.maximumf %53, %54 : vector<64x128xf32>
    %cst_51 = arith.constant 0.000000e+00 : f32
    %56 = vector.broadcast %cst_51 : f32 to vector<2x34x128xf32>
    %c0_52 = arith.constant 0 : index
    %c0_53 = arith.constant 0 : index
    %c0_54 = arith.constant 0 : index
    %57 = vector.load %arg16[%c0_52, %c0_53, %c0_54] : memref<2x34x128xf32, #tpu.memory_space<vmem>>, vector<2x34x128xf32>
    tpu.vector_store %arg16[%c0_52, %c0_53, %c0_54], %56 {strides = array<i32>} : memref<2x34x128xf32, #tpu.memory_space<vmem>>, vector<2x34x128xf32>,
    %58 = vector.shape_cast %55 : vector<64x128xf32> to vector<2x32x128xf32>
    %c0_55 = arith.constant 0 : index
    %c1_56 = arith.constant 1 : index
    %c0_57 = arith.constant 0 : index
    %59 = vector.load %arg16[%c0_55, %c1_56, %c0_57] : memref<2x34x128xf32, #tpu.memory_space<vmem>>, vector<2x32x128xf32>
    tpu.vector_store %arg16[%c0_55, %c1_56, %c0_57], %58 {strides = array<i32>} : memref<2x34x128xf32, #tpu.memory_space<vmem>>, vector<2x32x128xf32>,
    %cst_58 = arith.constant 0.000000e+00 : f32
    %60 = vector.broadcast %cst_58 : f32 to vector<64x128xf32>
    %c0_59 = arith.constant 0 : index
    %c0_60 = arith.constant 0 : index
    %c0_61 = arith.constant 0 : index
    %61 = vector.load %arg16[%c0_59, %c0_60, %c0_61] : memref<2x34x128xf32, #tpu.memory_space<vmem>>, vector<2x32x128xf32>
    %62 = vector.shape_cast %61 : vector<2x32x128xf32> to vector<64x128xf32>
    %c0_62 = arith.constant 0 : index
    %c0_63 = arith.constant 0 : index
    %c0_64 = arith.constant 0 : index
    %63 = vector.load %arg9[%c0_62, %c0_63, %c0_64] : memref<3x128x128xf32, #tpu.memory_space<vmem>>, vector<1x128x128xf32>
    %64 = vector.shape_cast %63 : vector<1x128x128xf32> to vector<128x128xf32>
    %cst_65 = arith.constant dense<0.000000e+00> : vector<64x128xf32>
    %65 = tpu.matmul %62, %64, %cst_65 {dimension_numbers = #tpu.dot_dimension_numbers<[1], [0], [0], [1], [0, 0, 1, 1], [], []>} : vector<64x128xf32>, vector<128x128xf32>, vector<64x128xf32> -> vector<64x128xf32>
    %66 = arith.addf %60, %65 : vector<64x128xf32>
    %c0_66 = arith.constant 0 : index
    %c1_67 = arith.constant 1 : index
    %c0_68 = arith.constant 0 : index
    %67 = vector.load %arg16[%c0_66, %c1_67, %c0_68] : memref<2x34x128xf32, #tpu.memory_space<vmem>>, vector<2x32x128xf32>
    %68 = vector.shape_cast %67 : vector<2x32x128xf32> to vector<64x128xf32>
    %c1_69 = arith.constant 1 : index
    %c0_70 = arith.constant 0 : index
    %c0_71 = arith.constant 0 : index
    %69 = vector.load %arg9[%c1_69, %c0_70, %c0_71] : memref<3x128x128xf32, #tpu.memory_space<vmem>>, vector<1x128x128xf32>
    %70 = vector.shape_cast %69 : vector<1x128x128xf32> to vector<128x128xf32>
    %cst_72 = arith.constant dense<0.000000e+00> : vector<64x128xf32>
    %71 = tpu.matmul %68, %70, %cst_72 {dimension_numbers = #tpu.dot_dimension_numbers<[1], [0], [0], [1], [0, 0, 1, 1], [], []>} : vector<64x128xf32>, vector<128x128xf32>, vector<64x128xf32> -> vector<64x128xf32>
    %72 = arith.addf %66, %71 : vector<64x128xf32>
    %c0_73 = arith.constant 0 : index
    %c2_74 = arith.constant 2 : index
    %c0_75 = arith.constant 0 : index
    %73 = vector.load %arg16[%c0_73, %c2_74, %c0_75] : memref<2x34x128xf32, #tpu.memory_space<vmem>>, vector<2x32x128xf32>
    %74 = vector.shape_cast %73 : vector<2x32x128xf32> to vector<64x128xf32>
    %c2_76 = arith.constant 2 : index
    %c0_77 = arith.constant 0 : index
    %c0_78 = arith.constant 0 : index
    %75 = vector.load %arg9[%c2_76, %c0_77, %c0_78] : memref<3x128x128xf32, #tpu.memory_space<vmem>>, vector<1x128x128xf32>
    %76 = vector.shape_cast %75 : vector<1x128x128xf32> to vector<128x128xf32>
    %cst_79 = arith.constant dense<0.000000e+00> : vector<64x128xf32>
    %77 = tpu.matmul %74, %76, %cst_79 {dimension_numbers = #tpu.dot_dimension_numbers<[1], [0], [0], [1], [0, 0, 1, 1], [], []>} : vector<64x128xf32>, vector<128x128xf32>, vector<64x128xf32> -> vector<64x128xf32>
    %78 = arith.addf %72, %77 : vector<64x128xf32>
    %c0_80 = arith.constant 0 : index
    %c0_81 = arith.constant 0 : index
    %79 = vector.load %arg10[%c0_80, %c0_81] : memref<1x128xf32, #tpu.memory_space<vmem>>, vector<1x128xf32>
    %80 = vector.broadcast %79 : vector<1x128xf32> to vector<64x128xf32>
    %81 = arith.addf %78, %80 : vector<64x128xf32>
    %c0_82 = arith.constant 0 : index
    %c0_83 = arith.constant 0 : index
    %82 = vector.load %arg11[%c0_82, %c0_83] : memref<1x128xf32, #tpu.memory_space<vmem>>, vector<1x128xf32>
    %c0_84 = arith.constant 0 : index
    %c0_85 = arith.constant 0 : index
    %83 = vector.load %arg12[%c0_84, %c0_85] : memref<1x128xf32, #tpu.memory_space<vmem>>, vector<1x128xf32>
    %cst_86 = arith.constant dense<0.000000e+00> : vector<128xf32>
    %84 = vector.multi_reduction <add>, %81, %cst_86 [0] : vector<64x128xf32> to vector<128xf32>
    %85 = vector.shape_cast %84 : vector<128xf32> to vector<1x128xf32>
    %cst_87 = arith.constant dense<0.000000e+00> : vector<1x128xf32>
    %86 = tpu.matmul %85, %0, %cst_87 {dimension_numbers = #tpu.dot_dimension_numbers<[1], [0], [0], [1], [0, 0, 1, 1], [], []>} : vector<1x128xf32>, vector<128x128xf32>, vector<1x128xf32> -> vector<1x128xf32>
    %87 = vector.broadcast %86 : vector<1x128xf32> to vector<64x128xf32>
    %88 = arith.subf %81, %87 : vector<64x128xf32>
    %89 = arith.mulf %88, %88 : vector<64x128xf32>
    %cst_88 = arith.constant dense<0.000000e+00> : vector<128xf32>
    %90 = vector.multi_reduction <add>, %89, %cst_88 [0] : vector<64x128xf32> to vector<128xf32>
    %91 = vector.shape_cast %90 : vector<128xf32> to vector<1x128xf32>
    %cst_89 = arith.constant dense<0.000000e+00> : vector<1x128xf32>
    %92 = tpu.matmul %91, %0, %cst_89 {dimension_numbers = #tpu.dot_dimension_numbers<[1], [0], [0], [1], [0, 0, 1, 1], [], []>} : vector<1x128xf32>, vector<128x128xf32>, vector<1x128xf32> -> vector<1x128xf32>
    %cst_90 = arith.constant 9.99999974E-6 : f32
    %93 = vector.broadcast %cst_90 : f32 to vector<1x128xf32>
    %94 = arith.addf %92, %93 : vector<1x128xf32>
    %95 = math.rsqrt %94 : vector<1x128xf32>
    %96 = arith.mulf %95, %82 : vector<1x128xf32>
    %97 = vector.broadcast %96 : vector<1x128xf32> to vector<64x128xf32>
    %98 = arith.mulf %88, %97 : vector<64x128xf32>
    %99 = vector.broadcast %83 : vector<1x128xf32> to vector<64x128xf32>
    %100 = arith.addf %98, %99 : vector<64x128xf32>
    %cst_91 = arith.constant 0.000000e+00 : f32
    %101 = vector.broadcast %cst_91 : f32 to vector<64x128xf32>
    %102 = arith.maximumf %100, %101 : vector<64x128xf32>
    %c0_92 = arith.constant 0 : index
    %c0_93 = arith.constant 0 : index
    %103 = vector.load %arg14[%c0_92, %c0_93] : memref<64x128xf32, #tpu.memory_space<vmem>>, vector<64x128xf32>
    tpu.vector_store %arg14[%c0_92, %c0_93], %102 {strides = array<i32>} : memref<64x128xf32, #tpu.memory_space<vmem>>, vector<64x128xf32>,
    return
  }
  func.func @transform_0(%arg0: i32) -> (i32, i32) {
    %c0_i32 = arith.constant 0 : i32
    %c0_i32_0 = arith.constant 0 : i32
    %c0_i32_1 = arith.constant 0 : i32
    return %c0_i32, %c0_i32_0 : i32, i32
  }
  func.func @transform_1(%arg0: i32) -> (i32, i32, i32) {
    %c0_i32 = arith.constant 0 : i32
    %c0_i32_0 = arith.constant 0 : i32
    %c0_i32_1 = arith.constant 0 : i32
    %c0_i32_2 = arith.constant 0 : i32
    return %c0_i32, %c0_i32_0, %c0_i32_1 : i32, i32, i32
  }
  func.func @transform_2(%arg0: i32) -> (i32, i32) {
    %c0_i32 = arith.constant 0 : i32
    %c0_i32_0 = arith.constant 0 : i32
    %c0_i32_1 = arith.constant 0 : i32
    return %c0_i32, %c0_i32_0 : i32, i32
  }
  func.func @transform_3(%arg0: i32) -> (i32, i32) {
    %c0_i32 = arith.constant 0 : i32
    %c0_i32_0 = arith.constant 0 : i32
    %c0_i32_1 = arith.constant 0 : i32
    return %c0_i32, %c0_i32_0 : i32, i32
  }
  func.func @transform_4(%arg0: i32) -> (i32, i32, i32) {
    %c0_i32 = arith.constant 0 : i32
    %c0_i32_0 = arith.constant 0 : i32
    %c0_i32_1 = arith.constant 0 : i32
    %c0_i32_2 = arith.constant 0 : i32
    return %c0_i32, %c0_i32_0, %c0_i32_1 : i32, i32, i32
  }
  func.func @transform_5(%arg0: i32) -> (i32, i32) {
    %c0_i32 = arith.constant 0 : i32
    %c0_i32_0 = arith.constant 0 : i32
    %c0_i32_1 = arith.constant 0 : i32
    return %c0_i32, %c0_i32_0 : i32, i32
  }
  func.func @transform_6(%arg0: i32) -> (i32, i32) {
    %c0_i32 = arith.constant 0 : i32
    %c0_i32_0 = arith.constant 0 : i32
    %c0_i32_1 = arith.constant 0 : i32
    return %c0_i32, %c0_i32_0 : i32, i32
  }
  func.func @transform_7(%arg0: i32) -> (i32, i32) {
    %c0_i32 = arith.constant 0 : i32
    %c0_i32_0 = arith.constant 0 : i32
    %c0_i32_1 = arith.constant 0 : i32
    return %c0_i32, %c0_i32_0 : i32, i32
  }
  func.func @transform_8(%arg0: i32) -> (i32, i32, i32) {
    %c0_i32 = arith.constant 0 : i32
    %c0_i32_0 = arith.constant 0 : i32
    %c0_i32_1 = arith.constant 0 : i32
    %c0_i32_2 = arith.constant 0 : i32
    return %c0_i32, %c0_i32_0, %c0_i32_1 : i32, i32, i32
  }
  func.func @transform_9(%arg0: i32) -> (i32, i32) {
    %c0_i32 = arith.constant 0 : i32
    %c0_i32_0 = arith.constant 0 : i32
    %c0_i32_1 = arith.constant 0 : i32
    return %c0_i32, %c0_i32_0 : i32, i32
  }
  func.func @transform_10(%arg0: i32) -> (i32, i32) {
    %c0_i32 = arith.constant 0 : i32
    %c0_i32_0 = arith.constant 0 : i32
    %c0_i32_1 = arith.constant 0 : i32
    return %c0_i32, %c0_i32_0 : i32, i32
  }
  func.func @transform_11(%arg0: i32) -> (i32, i32) {
    %c0_i32 = arith.constant 0 : i32
    %c0_i32_0 = arith.constant 0 : i32
    %c0_i32_1 = arith.constant 0 : i32
    return %c0_i32, %c0_i32_0 : i32, i32
  }
  func.func @transform_12(%arg0: i32) -> (i32, i32) {
    %c0_i32 = arith.constant 0 : i32
    %c0_i32_0 = arith.constant 0 : i32
    %c0_i32_1 = arith.constant 0 : i32
    return %c0_i32, %c0_i32_0 : i32, i32
  }
  func.func @transform_13(%arg0: i32) -> (i32, i32) {
    %c0_i32 = arith.constant 0 : i32
    %c0_i32_0 = arith.constant 0 : i32
    %c0_i32_1 = arith.constant 0 : i32
    return %c0_i32, %c0_i32_0 : i32, i32
  }
}

</mosaic_0001>

<bundles_post_ra>
// kernel: tile.43
= control target key start
LH: loop header
LB: loop body
LE: loop exit
PB: predicated region body
PF: predicated region fallthrough
CT: control target
= control target key end

     0   :  { %s40_s0 = inlined_call_operand.vmem [shape: f32[4], index: 0, kind: input, shape index: {}]   ;;  %s41_s1 = inlined_call_operand.vmem [shape: f32[32,4], index: 1, kind: output, shape index: {}]  }
   0x1   :  { %v4_v0 = vld [vmem:[%s40_s0] ss:$0 sm:$0xff] }
   0x2   :  { %5 = vst [vmem:[%s41_s1] sm:$0xff] %v4_v0  ;;  %12 = vst [vmem:[%s41_s1 + $0x8] sm:$0xff] %v4_v0 }
   0x3   :  { %13 = vst [vmem:[%s41_s1 + $0x10] sm:$0xff] %v4_v0  ;;  %14 = vst [vmem:[%s41_s1 + $0x18] sm:$0xff] %v4_v0 }

// kernel: tile.44
= control target key start
LH: loop header
LB: loop body
LE: loop exit
PB: predicated region body
PF: predicated region fallthrough
CT: control target
= control target key end

     0   :  { %s259_s10 = smov 124   ;;  %s260_s11 = smov 116   ;;  %vm3_vm0 = vcmask 31744   ;;  %vm9_vm1 = vcmask 1048544   ;;  %vm15_vm2 = vcmask 1015744   ;;  %vm21_vm3 = vcmask 982944   ;;  %s399_s0 = inlined_call_operand.vmem [shape: f32[32,4], index: 0, kind: input, shape index: {}]   ;;  %s400_s1 = inlined_call_operand.vmem [shape: f32[1,128], index: 1, kind: output, shape index: {}]  }
   0x1   :  { %v197_v0 = vld [vmem:[%s399_s0 + $0x1f] sm:$0x1]   ;;  %v199_v1 = vld [vmem:[%s399_s0 + $0x1d] sm:$0x1]   ;;  %v198_v2 = vld [vmem:[%s399_s0 + $0x1e] sm:$0x1]  }
   0x2   :  { %7 = vrot.lane.b32.xlu0 %v197_v0, %s259_s10  ;;  %19 = vrot.lane.b32.xlu1 %v199_v1, %s260_s11  ;;  %v200_v3 = vld [vmem:[%s399_s0 + $0x1c] sm:$0x1]   ;;  %s261_s16 = smov 120   ;;  %s262_s17 = smov 112   ;;  %v201_v4 = vld [vmem:[%s399_s0 + $0x1b] sm:$0x1]  }
   0x3   :  { %v202_v5 = vld [vmem:[%s399_s0 + $0x1a] sm:$0x1]   ;;  %s263_s22 = smov 108   ;;  %s264_s23 = smov 104   ;;  %v203_v6 = vld [vmem:[%s399_s0 + $0x19] sm:$0x1]  }
   0x4   :  { %v204_v7 = vld [vmem:[%s399_s0 + $0x18] sm:$0x1]   ;;  %s265_s28 = smov 100   ;;  %s266_s29 = smov 96   ;;  %v205_v8 = vld [vmem:[%s399_s0 + $0x17] sm:$0x1]  }
   0x5   :  { %v206_v9 = vld [vmem:[%s399_s0 + $0x16] sm:$0x1]   ;;  %v2_v10 = vld [vmem:[%s399_s0] sm:$0x1]   ;;  %s267_s7 = smov 92   ;;  %s268_s8 = smov 88  }
   0x6   :  { %13 = vrot.lane.b32.xlu0 %v198_v2, %s261_s16  ;;  %25 = vrot.lane.b32.xlu1 %v200_v3, %s262_s17  ;;  %4 = vst.msk [vmem:[#allocation0] sm:$0x1] %vm3_vm0, %v2_v10   ;;  %v207_v11 = vld [vmem:[%s399_s0 + $0x15] sm:$0x1]   ;;  %v208_v12 = vld [vmem:[%s399_s0 + $0x14] sm:$0x1]  }
   0x7   :  { %s269_s13 = smov 84   ;;  %s270_s14 = smov 80   ;;  %v209_v13 = vld [vmem:[%s399_s0 + $0x13] sm:$0x1]   ;;  %v210_v14 = vld [vmem:[%s399_s0 + $0x12] sm:$0x1]  }
   0x8   :  { %s271_s19 = smov 76   ;;  %s272_s20 = smov 72   ;;  %v211_v15 = vld [vmem:[%s399_s0 + $0x11] sm:$0x1]   ;;  %v212_v16 = vld [vmem:[%s399_s0 + $0x10] sm:$0x1]  }
   0x9   :  { %s273_s25 = smov 68   ;;  %s274_s26 = smov 64   ;;  %v213_v17 = vld [vmem:[%s399_s0 + $0xf] sm:$0x1]   ;;  %v214_v18 = vld [vmem:[%s399_s0 + $0xe] sm:$0x1]  }
   0xa   :  { %31 = vrot.lane.b32.xlu0 %v201_v4, %s263_s22  ;;  %37 = vrot.lane.b32.xlu1 %v202_v5, %s264_s23  ;;  %s275_s2 = smov 60   ;;  %s276_s3 = smov 56   ;;  %v215_v19 = vld [vmem:[%s399_s0 + $0xd] sm:$0x1]   ;;  %v216_v20 = vld [vmem:[%s399_s0 + $0xc] sm:$0x1]  }
   0xb   :  { %s278_s9 = smov 48   ;;  %v217_v21 = vld [vmem:[%s399_s0 + $0xb] sm:$0x1]   ;;  %v218_v22 = vld [vmem:[%s399_s0 + $0xa] sm:$0x1]   ;;  %s280_s15 = smov 40  }
   0xc   :  { %v219_v23 = vld [vmem:[%s399_s0 + $0x9] sm:$0x1]   ;;  %v220_v24 = vld [vmem:[%s399_s0 + $0x8] sm:$0x1]   ;;  %s282_s21 = smov 32   ;;  %s284_s27 = smov 24  }
   0xd   :  { %v221_v25 = vld [vmem:[%s399_s0 + $0x7] sm:$0x1]   ;;  %v222_v26 = vld [vmem:[%s399_s0 + $0x6] sm:$0x1]   ;;  %v223_v27 = vld [vmem:[%s399_s0 + $0x5] sm:$0x1]  }
   0xe   :  { %43 = vrot.lane.b32.xlu0 %v203_v6, %s265_s28  ;;  %49 = vrot.lane.b32.xlu1 %v204_v7, %s266_s29  ;;  %v224_v28 = vld [vmem:[%s399_s0 + $0x4] sm:$0x1]   ;;  %s286_s4 = smov 16   ;;  %v225_v29 = vld [vmem:[%s399_s0 + $0x3] sm:$0x1]   ;;  %s288_s10 = smov 8  }
   0xf   :  { %v226_v30 = vld [vmem:[%s399_s0 + $0x2] sm:$0x1]   ;;  %v227_v31 = vld [vmem:[%s399_s0 + $0x1] sm:$0x1]   ;;  %s289_s0 = smov 4   ;;  %vm27_vm4 = vcmask 950144  }
  0x10   :  { %vm33_vm5 = vcmask 917344   ;;  %vm39_vm6 = vcmask 884544   ;;  %vm45_vm7 = vcmask 851744   ;;  %vm51_vm8 = vcmask 818944  }
  0x11   :  { %vm57_vm9 = vcmask 786144   ;;  %vm63_vm10 = vcmask 753344   ;;  %vm69_vm11 = vcmask 720544   ;;  %vm75_vm12 = vcmask 687744  }
  0x12   :  { %55 = vrot.lane.b32.xlu0 %v205_v8, %s267_s7  ;;  %61 = vrot.lane.b32.xlu1 %v206_v9, %s268_s8  ;;  %s277_s8 = smov 52   ;;  %vm81_vm13 = vcmask 654944   ;;  %vm87_vm14 = vcmask 622144   ;;  %vm93_vm15 = vcmask 589344   ;;  %vm99_vm0 = vcmask 556544  }
  0x16   :  { %67 = vrot.lane.b32.xlu0 %v207_v11, %s269_s13  ;;  %73 = vrot.lane.b32.xlu1 %v208_v12, %s270_s14  ;;  %s279_s14 = smov 44  }
  0x1a   :  { %79 = vrot.lane.b32.xlu0 %v209_v13, %s271_s19  ;;  %85 = vrot.lane.b32.xlu1 %v210_v14, %s272_s20  ;;  %s281_s20 = smov 36  }
  0x1e   :  { %91 = vrot.lane.b32.xlu0 %v211_v15, %s273_s25  ;;  %97 = vrot.lane.b32.xlu1 %v212_v16, %s274_s26  ;;  %s283_s26 = smov 28  }
  0x22   :  { %103 = vrot.lane.b32.xlu0 %v213_v17, %s275_s2  ;;  %109 = vrot.lane.b32.xlu1 %v214_v18, %s276_s3  ;;  %s285_s3 = smov 20  }
  0x26   :  { %115 = vrot.lane.b32.xlu0 %v215_v19, %s277_s8  ;;  %121 = vrot.lane.b32.xlu1 %v216_v20, %s278_s9  ;;  %s287_s9 = smov 12  }
  0x2a   :  { %127 = vrot.lane.b32.xlu0 %v217_v21, %s279_s14  ;;  %133 = vrot.lane.b32.xlu1 %v218_v22, %s280_s15 }
  0x2e   :  { %139 = vrot.lane.b32.xlu0 %v219_v23, %s281_s20  ;;  %145 = vrot.lane.b32.xlu1 %v220_v24, %s282_s21 }
  0x32   :  { %151 = vrot.lane.b32.xlu0 %v221_v25, %s283_s26  ;;  %157 = vrot.lane.b32.xlu1 %v222_v26, %s284_s27 }
  0x36   :  { %163 = vrot.lane.b32.xlu0 %v223_v27, %s285_s3  ;;  %169 = vrot.lane.b32.xlu1 %v224_v28, %s286_s4 }
  0x3a   :  { %175 = vrot.lane.b32.xlu0 %v225_v29, %s287_s9  ;;  %181 = vrot.lane.b32.xlu1 %v226_v30, %s288_s10 }
  0x3e   :  { %187 = vrot.lane.b32.xlu0 %v227_v31, %s289_s0 }
  0x74   :  { %v8_v32 = vpop.permute.xlu0 %7   ;;  %v20_v33 = vpop.permute.xlu1 %19  }
  0x75   :  { %10 = vst.msk [vmem:[#allocation0] sm:$0x1] %vm9_vm1, %v8_v32   ;;  %vm105_vm1 = vcmask 523744  }
  0x78   :  { %v14_v34 = vpop.permute.xlu0 %13   ;;  %v26_v35 = vpop.permute.xlu1 %25  }
  0x79   :  { %16 = vst.msk [vmem:[#allocation0] sm:$0x1] %vm15_vm2, %v14_v34   ;;  %vm111_vm2 = vcmask 490944  }
  0x7a   :  { %22 = vst.msk [vmem:[#allocation0] sm:$0x1] %vm21_vm3, %v20_v33   ;;  %vm117_vm3 = vcmask 458144  }
  0x7b   :  { %28 = vst.msk [vmem:[#allocation0] sm:$0x1] %vm27_vm4, %v26_v35   ;;  %vm123_vm4 = vcmask 425344  }
  0x7c   :  { %v32_v36 = vpop.permute.xlu0 %31   ;;  %v38_v37 = vpop.permute.xlu1 %37  }
  0x7d   :  { %34 = vst.msk [vmem:[#allocation0] sm:$0x1] %vm33_vm5, %v32_v36   ;;  %vm129_vm5 = vcmask 392544  }
  0x7e   :  { %40 = vst.msk [vmem:[#allocation0] sm:$0x1] %vm39_vm6, %v38_v37   ;;  %vm135_vm6 = vcmask 359744  }
  0x80   :  { %v44_v38 = vpop.permute.xlu0 %43   ;;  %v50_v39 = vpop.permute.xlu1 %49  }
  0x81   :  { %46 = vst.msk [vmem:[#allocation0] sm:$0x1] %vm45_vm7, %v44_v38   ;;  %vm141_vm7 = vcmask 326944  }
  0x82   :  { %52 = vst.msk [vmem:[#allocation0] sm:$0x1] %vm51_vm8, %v50_v39   ;;  %vm147_vm8 = vcmask 294144  }
  0x84   :  { %v56_v40 = vpop.permute.xlu0 %55   ;;  %v62_v41 = vpop.permute.xlu1 %61  }
  0x85   :  { %58 = vst.msk [vmem:[#allocation0] sm:$0x1] %vm57_vm9, %v56_v40   ;;  %vm153_vm9 = vcmask 261344  }
  0x86   :  { %64 = vst.msk [vmem:[#allocation0] sm:$0x1] %vm63_vm10, %v62_v41   ;;  %vm159_vm10 = vcmask 228544  }
  0x88   :  { %v68_v42 = vpop.permute.xlu0 %67   ;;  %v74_v43 = vpop.permute.xlu1 %73  }
  0x89   :  { %70 = vst.msk [vmem:[#allocation0] sm:$0x1] %vm69_vm11, %v68_v42   ;;  %vm165_vm11 = vcmask 195744  }
  0x8a   :  { %76 = vst.msk [vmem:[#allocation0] sm:$0x1] %vm75_vm12, %v74_v43   ;;  %vm171_vm12 = vcmask 162944  }
  0x8c   :  { %v80_v44 = vpop.permute.xlu0 %79   ;;  %v86_v45 = vpop.permute.xlu1 %85  }
  0x8d   :  { %82 = vst.msk [vmem:[#allocation0] sm:$0x1] %vm81_vm13, %v80_v44   ;;  %vm177_vm13 = vcmask 130144  }
  0x8e   :  { %88 = vst.msk [vmem:[#allocation0] sm:$0x1] %vm87_vm14, %v86_v45   ;;  %vm183_vm14 = vcmask 97344  }
  0x90   :  { %v92_v46 = vpop.permute.xlu0 %91   ;;  %v98_v47 = vpop.permute.xlu1 %97  }
  0x91   :  { %94 = vst.msk [vmem:[#allocation0] sm:$0x1] %vm93_vm15, %v92_v46   ;;  %vm189_vm15 = vcmask 64544  }
  0x92   :  { %100 = vst.msk [vmem:[#allocation0] sm:$0x1] %vm99_vm0, %v98_v47  }
  0x94   :  { %v104_v48 = vpop.permute.xlu0 %103   ;;  %v110_v49 = vpop.permute.xlu1 %109  }
  0x95   :  { %106 = vst.msk [vmem:[#allocation0] sm:$0x1] %vm105_vm1, %v104_v48  }
  0x96   :  { %112 = vst.msk [vmem:[#allocation0] sm:$0x1] %vm111_vm2, %v110_v49  }
  0x98   :  { %v116_v50 = vpop.permute.xlu0 %115   ;;  %v122_v51 = vpop.permute.xlu1 %121  }
  0x99   :  { %118 = vst.msk [vmem:[#allocation0] sm:$0x1] %vm117_vm3, %v116_v50  }
  0x9a   :  { %124 = vst.msk [vmem:[#allocation0] sm:$0x1] %vm123_vm4, %v122_v51  }
  0x9c   :  { %v128_v52 = vpop.permute.xlu0 %127   ;;  %v134_v53 = vpop.permute.xlu1 %133  }
  0x9d   :  { %130 = vst.msk [vmem:[#allocation0] sm:$0x1] %vm129_vm5, %v128_v52  }
  0x9e   :  { %136 = vst.msk [vmem:[#allocation0] sm:$0x1] %vm135_vm6, %v134_v53  }
  0xa0   :  { %v140_v54 = vpop.permute.xlu0 %139   ;;  %v146_v55 = vpop.permute.xlu1 %145  }
  0xa1   :  { %142 = vst.msk [vmem:[#allocation0] sm:$0x1] %vm141_vm7, %v140_v54  }
  0xa2   :  { %148 = vst.msk [vmem:[#allocation0] sm:$0x1] %vm147_vm8, %v146_v55  }
  0xa4   :  { %v152_v56 = vpop.permute.xlu0 %151   ;;  %v158_v57 = vpop.permute.xlu1 %157  }
  0xa5   :  { %154 = vst.msk [vmem:[#allocation0] sm:$0x1] %vm153_vm9, %v152_v56  }
  0xa6   :  { %160 = vst.msk [vmem:[#allocation0] sm:$0x1] %vm159_vm10, %v158_v57  }
  0xa8   :  { %v164_v58 = vpop.permute.xlu0 %163   ;;  %v170_v59 = vpop.permute.xlu1 %169  }
  0xa9   :  { %166 = vst.msk [vmem:[#allocation0] sm:$0x1] %vm165_vm11, %v164_v58  }
  0xaa   :  { %172 = vst.msk [vmem:[#allocation0] sm:$0x1] %vm171_vm12, %v170_v59  }
  0xac   :  { %v176_v60 = vpop.permute.xlu0 %175   ;;  %v182_v61 = vpop.permute.xlu1 %181  }
  0xad   :  { %178 = vst.msk [vmem:[#allocation0] sm:$0x1] %vm177_vm13, %v176_v60  }
  0xae   :  { %184 = vst.msk [vmem:[#allocation0] sm:$0x1] %vm183_vm14, %v182_v61  }
  0xb0   :  { %v188_v62 = vpop.permute.xlu0 %187  }
  0xb1   :  { %190 = vst.msk [vmem:[#allocation0] sm:$0x1] %vm189_vm15, %v188_v62  }
  0xb8   :  { %v194_v63 = vld [vmem:[#allocation0] sm:$0x1] }
  0xb9   :  { %196 = vst [vmem:[%s400_s1] sm:$0x1] %v194_v63 }

// kernel: decoder_block_apply.1
= control target key start
LH: loop header
LB: loop body
LE: loop exit
PB: predicated region body
PF: predicated region fallthrough
CT: control target
= control target key end

     0   :  { %vm224_vm0 = vcmask 1040384   ;;  %vm385_vm1 = vcmask 1046528   ;;  %vm697_vm2 = vcmask 1045504   ;;  %vm2896_vm3 = vmmov 0   ;;  %s3902_s2 = inlined_call_operand.vmem [shape: f32[128,128], index: 2, kind: input, shape index: {}]   ;;  %s3903_s0 = inlined_call_operand.vmem [shape: f32[64,128], index: 0, kind: input, shape index: {}]   ;;  %s3904_s4 = inlined_call_operand.vmem [shape: f32[3,256,128], index: 4, kind: input, shape index: {}]   ;;  %s3905_s1 = inlined_call_operand.vmem [shape: f32[2,32,128], index: 1, kind: input, shape index: {}]   ;;  %s3906_s3 = inlined_call_operand.vmem [shape: f32[1,128], index: 3, kind: input, shape index: {}]   ;;  %s3907_s12 = inlined_call_operand.vmem [shape: f32[128,128], index: 12, kind: input, shape index: {}]   ;;  %s3908_s5 = inlined_call_operand.vmem [shape: f32[1,128], index: 5, kind: input, shape index: {}]   ;;  %s3909_s8 = inlined_call_operand.vmem [shape: f32[3,128,128], index: 8, kind: input, shape index: {}]   ;;  %s3910_s6 = inlined_call_operand.vmem [shape: f32[1,128], index: 6, kind: input, shape index: {}]   ;;  %s3911_s7 = inlined_call_operand.vmem [shape: f32[1,128], index: 7, kind: input, shape index: {}]   ;;  %s3912_s9 = inlined_call_operand.vmem [shape: f32[1,128], index: 9, kind: input, shape index: {}]   ;;  %s3913_s10 = inlined_call_operand.vmem [shape: f32[1,128], index: 10, kind: input, shape index: {}]   ;;  %s3914_s11 = inlined_call_operand.vmem [shape: f32[1,128], index: 11, kind: input, shape index: {}]   ;;  %s3915_s13 = inlined_call_operand.vmem [shape: f32[64,128], index: 13, kind: output, shape index: {}]  }
   0x1   :  { %v68_v0 = vld [vmem:[%s3902_s2] sm:$0xff]  ;;  %v69_v1 = vld [vmem:[%s3902_s2 + $0x8] sm:$0xff]  ;;  %v70_v2 = vld [vmem:[%s3902_s2 + $0x10] sm:$0xff] }
   0x2   :  { %v2550_v3 = vpack.c.bf16 %v69_v1, %v68_v0  ;;  %v71_v4 = vld [vmem:[%s3902_s2 + $0x18] sm:$0xff]  ;;  %v72_v6 = vld [vmem:[%s3902_s2 + $0x20] sm:$0xff]  ;;  %v73_v7 = vld [vmem:[%s3902_s2 + $0x28] sm:$0xff] }
   0x3   :  { %v2554_v5 = vpack.c.bf16 %v71_v4, %v70_v2  ;;  %v2558_v8 = vpack.c.bf16 %v73_v7, %v72_v6  ;;  %v60_v9 = vld [vmem:[%s3903_s0] sm:$0xff]  ;;  %v74_v10 = vld [vmem:[%s3902_s2 + $0x30] sm:$0xff]  ;;  %v75_v11 = vld [vmem:[%s3902_s2 + $0x38] sm:$0xff] }
   0x4   :  { %2551 = vmatprep.subr.bf16.mxu1 %v2550_v3  ;;  %2266 = vmatprep.mubr.f32.mxu1 %v60_v9  ;;  %v341_v12 = vld [vmem:[%s3904_s4 + $0x80] sm:$0xff]  ;;  %v342_v13 = vld [vmem:[%s3904_s4 + $0x88] sm:$0xff]  ;;  %v2562_v15 = vpack.c.bf16 %v75_v11, %v74_v10  ;;  %v343_v21 = vld [vmem:[%s3904_s4 + $0x90] sm:$0xff] }
   0x5   :  { %2553 = vmatpush3.bf16.msra.mxu1 %v2550_v3  ;;  %v325_v14 = vld [vmem:[%s3904_s4] sm:$0xff]  ;;  %v2614_v16 = vpack.c.bf16 %v342_v13, %v341_v12  ;;  %v326_v17 = vld [vmem:[%s3904_s4 + $0x8] sm:$0xff]  ;;  %v344_v22 = vld [vmem:[%s3904_s4 + $0x98] sm:$0xff] }
   0x6   :  { %2555 = vmatprep.subr.bf16.mxu1 %v2554_v5  ;;  %v76_v18 = vld [vmem:[%s3902_s2 + $0x40] sm:$0xff]  ;;  %v77_v19 = vld [vmem:[%s3902_s2 + $0x48] sm:$0xff]  ;;  %v2616_v20 = vpack.c.bf16 %v326_v17, %v325_v14  ;;  %v327_v23 = vld [vmem:[%s3904_s4 + $0x10] sm:$0xff]  ;;  %v2618_v25 = vpack.c.bf16 %v344_v22, %v343_v21 }
   0x7   :  { %2615 = vmatprep.subr.bf16.mxu0 %v2614_v16  ;;  %v328_v24 = vld [vmem:[%s3904_s4 + $0x18] sm:$0xff]  ;;  %v2566_v27 = vpack.c.bf16 %v77_v19, %v76_v18  ;;  %v78_v28 = vld [vmem:[%s3902_s2 + $0x50] sm:$0xff]  ;;  %v345_v29 = vld [vmem:[%s3904_s4 + $0xa0] sm:$0xff] }
   0x8   :  { %2617 = vmatpush3.bf16.msra.mxu0 %v2616_v20  ;;  %v2620_v26 = vpack.c.bf16 %v328_v24, %v327_v23  ;;  %v346_v30 = vld [vmem:[%s3904_s4 + $0xa8] sm:$0xff]  ;;  %v79_v31 = vld [vmem:[%s3902_s2 + $0x58] sm:$0xff]  ;;  %v329_v33 = vld [vmem:[%s3904_s4 + $0x20] sm:$0xff] }
   0x9   :  { %2557 = vmatpush3.bf16.msra.mxu1 %v2554_v5  ;;  %2619 = vmatprep.subr.bf16.mxu0 %v2618_v25  ;;  %v2622_v32 = vpack.c.bf16 %v346_v30, %v345_v29  ;;  %v330_v34 = vld [vmem:[%s3904_s4 + $0x28] sm:$0xff]  ;;  %v347_v36 = vld [vmem:[%s3904_s4 + $0xb0] sm:$0xff]  ;;  %v348_v37 = vld [vmem:[%s3904_s4 + $0xb8] sm:$0xff]  ;;  %v2570_v38 = vpack.c.bf16 %v79_v31, %v78_v28 }
   0xa   :  { %2559 = vmatprep.subr.bf16.mxu1 %v2558_v8  ;;  %v2624_v35 = vpack.c.bf16 %v330_v34, %v329_v33  ;;  %v2626_v39 = vpack.c.bf16 %v348_v37, %v347_v36  ;;  %v331_v40 = vld [vmem:[%s3904_s4 + $0x30] sm:$0xff]  ;;  %v332_v41 = vld [vmem:[%s3904_s4 + $0x38] sm:$0xff]  ;;  %v80_v42 = vld [vmem:[%s3902_s2 + $0x60] sm:$0xff] }
   0xb   :  { %v81_v43 = vld [vmem:[%s3902_s2 + $0x68] sm:$0xff]  ;;  %v349_v44 = vld [vmem:[%s3904_s4 + $0xc0] sm:$0xff]  ;;  %v2628_v46 = vpack.c.bf16 %v332_v41, %v331_v40  ;;  %v82_v51 = vld [vmem:[%s3902_s2 + $0x70] sm:$0xff] }
   0xc   :  { %2621 = vmatpush3.bf16.msra.mxu0 %v2620_v26  ;;  %v350_v45 = vld [vmem:[%s3904_s4 + $0xc8] sm:$0xff]  ;;  %v2574_v47 = vpack.c.bf16 %v81_v43, %v80_v42  ;;  %v333_v49 = vld [vmem:[%s3904_s4 + $0x40] sm:$0xff]  ;;  %v83_v52 = vld [vmem:[%s3902_s2 + $0x78] sm:$0xff]  ;;  %v2894_v42 = vmov 0.0  }
   0xd   :  { %2561 = vmatpush3.bf16.msra.mxu1 %v2558_v8  ;;  %2623 = vmatprep.subr.bf16.mxu0 %v2622_v32  ;;  %v2630_v48 = vpack.c.bf16 %v350_v45, %v349_v44  ;;  %v334_v50 = vld [vmem:[%s3904_s4 + $0x48] sm:$0xff]  ;;  %v2578_v54 = vpack.c.bf16 %v83_v52, %v82_v51  ;;  %v1818_v55 = vld [vmem:[%s3904_s4 + $0x180] sm:$0xff]  ;;  %v1820_v60 = vld [vmem:[%s3904_s4 + $0x190] sm:$0xff]  ;;  %196 = vst [vmem:[#allocation2] sm:$0xff] %v2894_v42 }
   0xe   :  { %2563 = vmatprep.subr.bf16.mxu1 %v2562_v15  ;;  %v2632_v53 = vpack.c.bf16 %v334_v50, %v333_v49  ;;  %v1819_v56 = vld [vmem:[%s3904_s4 + $0x188] sm:$0xff]  ;;  %v1802_v58 = vld [vmem:[%s3904_s4 + $0x100] sm:$0xff]  ;;  %v1821_v61 = vld [vmem:[%s3904_s4 + $0x198] sm:$0xff]  ;;  %197 = vst [vmem:[#allocation2 + $0x8] sm:$0xff] %v2894_v42 }
   0xf   :  { %v2582_v57 = vpack.c.bf16 %v1819_v56, %v1818_v55  ;;  %v1803_v59 = vld [vmem:[%s3904_s4 + $0x108] sm:$0xff]  ;;  %v62_v0 = vld [vmem:[%s3903_s0 + $0x10] sm:$0xff]  ;;  %v2586_v1 = vpack.c.bf16 %v1821_v61, %v1820_v60  ;;  %v1805_v3 = vld [vmem:[%s3904_s4 + $0x118] sm:$0xff]  ;;  %204 = vst [vmem:[#allocation2 + $0x40] sm:$0x3] %v2894_v42 }
  0x10   :  { %2625 = vmatpush3.bf16.msra.mxu0 %v2624_v35  ;;  %v61_v62 = vld [vmem:[%s3903_s0 + $0x8] sm:$0xff]  ;;  %v2584_v63 = vpack.c.bf16 %v1803_v59, %v1802_v58  ;;  %v1804_v2 = vld [vmem:[%s3904_s4 + $0x110] sm:$0xff]  ;;  %v1822_v4 = vld [vmem:[%s3904_s4 + $0x1a0] sm:$0xff]  ;;  %205 = vst [vmem:[#allocation2 + $0x48] sm:$0x3] %v2894_v42 }
  0x11   :  { %2565 = vmatpush3.bf16.msra.mxu1 %v2562_v15  ;;  %2627 = vmatprep.subr.bf16.mxu0 %v2626_v39  ;;  %v1823_v5 = vld [vmem:[%s3904_s4 + $0x1a8] sm:$0xff]  ;;  %v63_v6 = vld [vmem:[%s3903_s0 + $0x18] sm:$0xff]  ;;  %v2588_v7 = vpack.c.bf16 %v1805_v3, %v1804_v2  ;;  %v64_v8 = vld [vmem:[%s3903_s0 + $0x20] sm:$0xff]  ;;  %206 = vst [vmem:[#allocation2 + $0x50] sm:$0xff] %v2894_v42 }
  0x12   :  { %2567 = vmatprep.subr.bf16.mxu1 %v2566_v27  ;;  %v2590_v9 = vpack.c.bf16 %v1823_v5, %v1822_v4  ;;  %v1806_v10 = vld [vmem:[%s3904_s4 + $0x120] sm:$0xff]  ;;  %v1807_v11 = vld [vmem:[%s3904_s4 + $0x128] sm:$0xff]  ;;  %v1824_v12 = vld [vmem:[%s3904_s4 + $0x1b0] sm:$0xff]  ;;  %207 = vst [vmem:[#allocation2 + $0x58] sm:$0xff] %v2894_v42 }
  0x13   :  { %v1825_v13 = vld [vmem:[%s3904_s4 + $0x1b8] sm:$0xff]  ;;  %v65_v14 = vld [vmem:[%s3903_s0 + $0x28] sm:$0xff]  ;;  %v2592_v15 = vpack.c.bf16 %v1807_v11, %v1806_v10  ;;  %v66_v16 = vld [vmem:[%s3903_s0 + $0x30] sm:$0xff]  ;;  %214 = vst [vmem:[#allocation2 + $0x90] sm:$0x3] %v2894_v42 }
  0x14   :  { %2629 = vmatpush3.bf16.msra.mxu0 %v2628_v46  ;;  %v2594_v17 = vpack.c.bf16 %v1825_v13, %v1824_v12  ;;  %v1808_v18 = vld [vmem:[%s3904_s4 + $0x130] sm:$0xff]  ;;  %v1809_v19 = vld [vmem:[%s3904_s4 + $0x138] sm:$0xff]  ;;  %v1826_v22 = vld [vmem:[%s3904_s4 + $0x1c0] sm:$0xff]  ;;  %215 = vst [vmem:[#allocation2 + $0x98] sm:$0x3] %v2894_v42 }
  0x15   :  { %2569 = vmatpush3.bf16.msra.mxu1 %v2566_v27  ;;  %2631 = vmatprep.subr.bf16.mxu0 %v2630_v48  ;;  %v67_v20 = vld [vmem:[%s3903_s0 + $0x38] sm:$0xff]  ;;  %v2596_v21 = vpack.c.bf16 %v1809_v19, %v1808_v18  ;;  %v1827_v23 = vld [vmem:[%s3904_s4 + $0x1c8] sm:$0xff]  ;;  %v1810_v25 = vld [vmem:[%s3904_s4 + $0x140] sm:$0xff]  ;;  %1135 = vst [vmem:[#allocation3] sm:$0xff] %v2894_v42 }
  0x16   :  { %2571 = vmatprep.subr.bf16.mxu1 %v2570_v38  ;;  %v2598_v24 = vpack.c.bf16 %v1827_v23, %v1826_v22  ;;  %v1811_v26 = vld [vmem:[%s3904_s4 + $0x148] sm:$0xff]  ;;  %v351_v27 = vld [vmem:[%s3904_s4 + $0xd0] sm:$0xff]  ;;  %v352_v29 = vld [vmem:[%s3904_s4 + $0xd8] sm:$0xff]  ;;  %1136 = vst [vmem:[#allocation3 + $0x8] sm:$0xff] %v2894_v42 }
  0x17   :  { %v2600_v28 = vpack.c.bf16 %v1811_v26, %v1810_v25  ;;  %v335_v30 = vld [vmem:[%s3904_s4 + $0x50] sm:$0xff]  ;;  %v2634_v31 = vpack.c.bf16 %v352_v29, %v351_v27  ;;  %v336_v32 = vld [vmem:[%s3904_s4 + $0x58] sm:$0xff]  ;;  %v3180_v36 = vld [vmem:[%s3905_s1] sm:$0xff]  ;;  %1137 = vst [vmem:[#allocation3 + $0x10] sm:$0xff] %v2894_v42 }
  0x18   :  { %2633 = vmatpush3.bf16.msra.mxu0 %v2632_v53  ;;  %v2636_v33 = vpack.c.bf16 %v336_v32, %v335_v30  ;;  %v1828_v34 = vld [vmem:[%s3904_s4 + $0x1d0] sm:$0xff]  ;;  %v1829_v35 = vld [vmem:[%s3904_s4 + $0x1d8] sm:$0xff]  ;;  %v353_v40 = vld [vmem:[%s3904_s4 + $0xe0] sm:$0xff]  ;;  %v275_v41 = vrot.slane %v3180_v36, 7  ;;  %1138 = vst [vmem:[#allocation3 + $0x18] sm:$0xff] %v2894_v42 }
  0x19   :  { %2573 = vmatpush3.bf16.msra.mxu1 %v2570_v38  ;;  %2635 = vmatprep.subr.bf16.mxu0 %v2634_v31  ;;  %v2602_v37 = vpack.c.bf16 %v1829_v35, %v1828_v34  ;;  %v1812_v38 = vld [vmem:[%s3904_s4 + $0x150] sm:$0xff]  ;;  %v1813_v39 = vld [vmem:[%s3904_s4 + $0x158] sm:$0xff]  ;;  %1139 = vst [vmem:[#allocation3 + $0x20] sm:$0x3] %v2894_v42  ;;  %1140 = vst [vmem:[#allocation3 + $0x28] sm:$0xff] %v2894_v42 }
  0x1a   :  { %2575 = vmatprep.subr.bf16.mxu1 %v2574_v47  ;;  %1141 = vst [vmem:[#allocation3 + $0x30] sm:$0xff] %v2894_v42  ;;  %1142 = vst [vmem:[#allocation3 + $0x38] sm:$0xff] %v2894_v42  ;;  %v2604_v43 = vpack.c.bf16 %v1813_v39, %v1812_v38  ;;  %v354_v44 = vld [vmem:[%s3904_s4 + $0xe8] sm:$0xff]  ;;  %v337_v45 = vld [vmem:[%s3904_s4 + $0x60] sm:$0xff] }
  0x1b   :  { %1143 = vst [vmem:[#allocation3 + $0x40] sm:$0xff] %v2894_v42  ;;  %1144 = vst [vmem:[#allocation3 + $0x48] sm:$0x3] %v2894_v42  ;;  %v338_v46 = vld [vmem:[%s3904_s4 + $0x68] sm:$0xff]  ;;  %v1830_v49 = vld [vmem:[%s3904_s4 + $0x1e0] sm:$0xff] }
  0x1c   :  { %2637 = vmatpush3.bf16.msra.mxu0 %v2636_v33  ;;  %v2640_v48 = vpack.c.bf16 %v338_v46, %v337_v45  ;;  %299 = vst [vmem:[#allocation2 + $0x8] sm:$0xfe] %v275_v41  ;;  %v1831_v50 = vld [vmem:[%s3904_s4 + $0x1e8] sm:$0xff]  ;;  %v1814_v52 = vld [vmem:[%s3904_s4 + $0x160] sm:$0xff]  ;;  %v356_v56 = vld [vmem:[%s3904_s4 + $0xf8] sm:$0xff] }
  0x1d   :  { %2577 = vmatpush3.bf16.msra.mxu1 %v2574_v47  ;;  %v2638_v47 = vpack.c.bf16 %v354_v44, %v353_v40  ;;  %v2606_v51 = vpack.c.bf16 %v1831_v50, %v1830_v49  ;;  %v1815_v53 = vld [vmem:[%s3904_s4 + $0x168] sm:$0xff]  ;;  %v340_v58 = vld [vmem:[%s3904_s4 + $0x78] sm:$0xff]  ;;  %v1816_v2 = vld [vmem:[%s3904_s4 + $0x170] sm:$0xff] }
  0x1e   :  { %2579 = vmatprep.subr.bf16.mxu1 %v2578_v54  ;;  %v2608_v55 = vpack.c.bf16 %v1815_v53, %v1814_v52  ;;  %v260_v61 = vld [vmem:[%s3905_s1 + $0x8] sm:$0xff]  ;;  %v1817_v3 = vld [vmem:[%s3904_s4 + $0x178] sm:$0xff]  ;;  %v261_v10 = vld [vmem:[%s3905_s1 + $0x10] sm:$0xff] }
  0x1f   :  { %2639 = vmatprep.subr.bf16.mxu0 %v2638_v47  ;;  %v1850_v11 = vld [vmem:[%s3904_s4 + $0x280] sm:$0xff]  ;;  %v1851_v12 = vld [vmem:[%s3904_s4 + $0x288] sm:$0xff]  ;;  %v278_v13 = vrot.slane %v261_v10, 7  ;;  %v265_v25 = vld [vmem:[%s3905_s1 + $0x30] sm:$0xff] }
  0x20   :  { %2641 = vmatpush3.bf16.msra.mxu0 %v2640_v48  ;;  %v263_v19 = vld [vmem:[%s3905_s1 + $0x20] sm:$0xff]  ;;  %v264_v22 = vld [vmem:[%s3905_s1 + $0x28] sm:$0xff]  ;;  %v285_v26 = vrot.slane %v265_v25, 7  ;;  %v266_v27 = vld [vmem:[%s3905_s1 + $0x38] sm:$0xff] }
  0x21   :  { %2581 = vmatpush3.bf16.msra.mxu1 %v2578_v54  ;;  %v355_v54 = vld [vmem:[%s3904_s4 + $0xf0] sm:$0xff]  ;;  %v283_v23 = vrot.slane %v264_v22, 7  ;;  %v1801_v31 = vld [vmem:[%s3906_s3] ss:$0 sm:$0xff] }
  0x22   :  { %2583 = vmatprep.subr.bf16.mxu1 %v2582_v57  ;;  %v339_v57 = vld [vmem:[%s3904_s4 + $0x70] sm:$0xff]  ;;  %v2642_v59 = vpack.c.bf16 %v356_v56, %v355_v54  ;;  %v1835_v56 = vld [vmem:[%s3904_s4 + $0x208] sm:$0xff] }
  0x23   :  { %v2644_v60 = vpack.c.bf16 %v340_v58, %v339_v57  ;;  %v310_v5 = vld [vmem:[#allocation2 + $0x8] sm:$0xff]  ;;  %v3299_v29 = vsel %vm224_vm0, %v283_v23, %v285_v26 }
  0x24   :  { %2267 = vmatmul.mubr.f32.vlgmr.msra.gmra.mrb[0].mxu1 %v61_v62  ;;  %v1832_v62 = vld [vmem:[%s3904_s4 + $0x1f0] sm:$0xff]  ;;  %2643 = vmatprep.subr.bf16.mxu0 %v2642_v59 }
  0x25   :  { %2269 = vmatprep.mubr.f32.mxu1 %v62_v0  ;;  %2585 = vmatpush3.bf16.msra.mxu1 %v2584_v63  ;;  %v1833_v63 = vld [vmem:[%s3904_s4 + $0x1f8] sm:$0xff]  ;;  %v276_v0 = vrot.slane %v260_v61, 7 }
  0x26   :  { %2587 = vmatprep.subr.bf16.mxu1 %v2586_v1  ;;  %v2610_v1 = vpack.c.bf16 %v1833_v63, %v1832_v62  ;;  %2645 = vmatpush3.bf16.msra.mxu0 %v2644_v60  ;;  %v1852_v63 = vld [vmem:[%s3904_s4 + $0x290] sm:$0xff] }
  0x27   :  { %v3259_v4 = vsel %vm224_vm0, %v275_v41, %v276_v0  ;;  %640 = vmatprep.mubr.f32.mxu0 %v310_v5  ;;  %v3278_v18 = vsel %vm224_vm0, %v276_v0, %v278_v13 }
  0x28   :  { %2270 = vmatmul.mubr.f32.gmra.mrb[2].mxu1 %v63_v6  ;;  %v2612_v6 = vpack.c.bf16 %v1817_v3, %v1816_v2  ;;  %v394_v62 = vrot.slane %v3278_v18, 1 }
  0x29   :  { %2272 = vmatprep.mubr.f32.mxu1 %v64_v8  ;;  %2589 = vmatpush3.bf16.msra.mxu1 %v2588_v7  ;;  %v358_v7 = vld [vmem:[#allocation2 + $0x8] sm:$0xfe] }
  0x2a   :  { %2591 = vmatprep.subr.bf16.mxu1 %v2590_v9  ;;  %v389_v8 = vrot.slane %v358_v7, 1  ;;  %v390_v9 = vrot.slane %v3259_v4, 1 }
  0x2c   :  { %2273 = vmatmul.mubr.f32.gmra.mrb[4].mxu1 %v65_v14  ;;  %v262_v14 = vld [vmem:[%s3905_s1 + $0x18] sm:$0xff]  ;;  %v395_v25 = vsel %vm385_vm1, %v390_v9, %v394_v62 }
  0x2d   :  { %2275 = vmatprep.mubr.f32.mxu1 %v66_v16  ;;  %2593 = vmatpush3.bf16.msra.mxu1 %v2592_v15  ;;  %v391_v15 = vsel %vm385_vm1, %v389_v8, %v390_v9  ;;  %v2646_v16 = vpack.c.bf16 %v1851_v12, %v1850_v11 }
  0x2e   :  { %2595 = vmatprep.subr.bf16.mxu1 %v2594_v17  ;;  %v280_v17 = vrot.slane %v262_v14, 7 }
  0x30   :  { %2276 = vmatmul.mubr.f32.gmra.mrb[6].mxu1 %v67_v20  ;;  %303 = vst [vmem:[#allocation2 + $0x48] sm:$0x1] %v280_v17  ;;  %v282_v20 = vrot.slane %v263_v19, 7 }
  0x31   :  { %2597 = vmatpush3.bf16.msra.mxu1 %v2596_v21  ;;  %535 = vmatprep.mubr.f32.mxu1 %v391_v15  ;;  %v3284_v21 = vsel %vm224_vm0, %v278_v13, %v280_v17  ;;  %v1837_v17 = vld [vmem:[%s3904_s4 + $0x218] sm:$0xff] }
  0x32   :  { %2599 = vmatprep.subr.bf16.mxu1 %v2598_v24  ;;  %304 = vst [vmem:[#allocation2 + $0x58] sm:$0xfe] %v282_v20  ;;  %v3290_v24 = vsel %vm224_vm0, %v282_v20, %v283_v23  ;;  %v398_v19 = vrot.slane %v3284_v21, 1 }
  0x35   :  { %2601 = vmatpush3.bf16.msra.mxu1 %v2600_v28  ;;  %v287_v28 = vrot.slane %v266_v27, 7  ;;  %v1854_v27 = vld [vmem:[%s3904_s4 + $0x2a0] sm:$0xff] }
  0x36   :  { %2603 = vmatprep.subr.bf16.mxu1 %v2602_v37 }
  0x37   :  { %308 = vst [vmem:[#allocation2 + $0x98] sm:$0x1] %v287_v28  ;;  %v3302_v30 = vsel %vm224_vm0, %v285_v26, %v287_v28  ;;  %v1855_v28 = vld [vmem:[%s3904_s4 + $0x2a8] sm:$0xff] }
  0x39   :  { %2605 = vmatpush3.bf16.msra.mxu1 %v2604_v43 }
  0x3a   :  { %2607 = vmatprep.subr.bf16.mxu1 %v2606_v51 }
  0x3d   :  { %2609 = vmatpush3.bf16.msra.mxu1 %v2608_v55  ;;  %v1834_v55 = vld [vmem:[%s3904_s4 + $0x200] sm:$0xff] }
  0x3e   :  { %2611 = vmatprep.subr.bf16.mxu1 %v2610_v1  ;;  %v2648_v14 = vpack.c.bf16 %v1835_v56, %v1834_v55 }
  0x41   :  { %2613 = vmatpush3.bf16.msra.mxu1 %v2612_v6  ;;  %v1853_v6 = vld [vmem:[%s3904_s4 + $0x298] sm:$0xff] }
  0x42   :  { %2647 = vmatprep.subr.bf16.mxu1 %v2646_v16  ;;  %v1836_v16 = vld [vmem:[%s3904_s4 + $0x210] sm:$0xff]  ;;  %v2650_v26 = vpack.c.bf16 %v1853_v6, %v1852_v63  ;;  %v1859_v6 = vld [vmem:[%s3904_s4 + $0x2c8] sm:$0xff] }
  0x43   :  { %v2652_v9 = vpack.c.bf16 %v1837_v17, %v1836_v16 }
  0xf7   :  { %v2268_v32 = vpop.f32.mrb[0].mxu1 }
  0xf8   :  { %v163_v33 = vadd.f32 %v2268_v32, %v1801_v31  ;;  %v157_v34 = vpop.f32.mrb[1].mxu1 }
  0xf9   :  { %v158_v35 = vadd.f32 %v1801_v31, %v157_v34 }
  0xfa   :  { %v226_v36 = vrot.slane %v163_v33, 7 }
  0xfb   :  { %v225_v37 = vrot.slane %v158_v35, 7  ;;  %v2271_v38 = vpop.f32.mrb[2].mxu1 }
  0xfc   :  { %v173_v39 = vadd.f32 %v2271_v38, %v1801_v31  ;;  %v167_v40 = vpop.f32.mrb[3].mxu1  ;;  %v1839_v38 = vld [vmem:[%s3904_s4 + $0x228] sm:$0xff] }
  0xfd   :  { %v3308_v41 = vsel %vm224_vm0, %v225_v37, %v226_v36  ;;  %249 = vst [vmem:[#allocation2] sm:$0xfe] %v225_v37  ;;  %v168_v43 = vadd.f32 %v1801_v31, %v167_v40  ;;  %v1838_v37 = vld [vmem:[%s3904_s4 + $0x220] sm:$0xff] }
  0xfe   :  { %v230_v44 = vrot.slane %v173_v39, 7  ;;  %v387_v49 = vrot.slane %v3308_v41, 1  ;;  %v699_v53 = vrot.slane %v3308_v41, 2  ;;  %v2656_v56 = vpack.c.bf16 %v1839_v38, %v1838_v37  ;;  %v1862_v37 = vld [vmem:[%s3904_s4 + $0x2e0] sm:$0xff]  ;;  %v1863_v38 = vld [vmem:[%s3904_s4 + $0x2e8] sm:$0xff] }
  0xff   :  { %v228_v45 = vrot.slane %v168_v43, 7  ;;  %v2274_v46 = vpop.f32.mrb[4].mxu1  ;;  %v2654_v43 = vpack.c.bf16 %v1855_v28, %v1854_v27  ;;  %v1845_v27 = vld [vmem:[%s3904_s4 + $0x258] sm:$0xff] }
 0x100   :  { %253 = vst [vmem:[#allocation2 + $0x40] sm:$0x1] %v230_v44  ;;  %v183_v47 = vadd.f32 %v2274_v46, %v1801_v31  ;;  %v177_v48 = vpop.f32.mrb[5].mxu1 }
 0x101   :  { %v3312_v50 = vsel %vm224_vm0, %v226_v36, %v228_v45  ;;  %v3315_v51 = vsel %vm224_vm0, %v228_v45, %v230_v44  ;;  %v178_v52 = vadd.f32 %v1801_v31, %v177_v48  ;;  %v399_v36 = vsel %vm385_vm1, %v394_v62, %v398_v19  ;;  %v362_v45 = vld [vmem:[#allocation2 + $0x58] sm:$0xfe]  ;;  %v1856_v48 = vld [vmem:[%s3904_s4 + $0x2b0] sm:$0xff] }
 0x102   :  { %v233_v54 = vrot.slane %v183_v47, 7  ;;  %v392_v57 = vrot.slane %v3312_v50, 1  ;;  %v396_v58 = vrot.slane %v3315_v51, 1  ;;  %v704_v59 = vrot.slane %v3312_v50, 2 }
 0x103   :  { %v232_v60 = vrot.slane %v178_v52, 7  ;;  %v2277_v61 = vpop.f32.mrb[6].mxu1  ;;  %v708_v0 = vrot.slane %v3315_v51, 2  ;;  %v408_v62 = vrot.slane %v3290_v24, 1 }
 0x104   :  { %v309_v1 = vld [vmem:[#allocation2] sm:$0xff]  ;;  %v193_v2 = vadd.f32 %v2277_v61, %v1801_v31  ;;  %v187_v3 = vpop.f32.mrb[7].mxu1  ;;  %v393_v7 = vsel %vm385_vm1, %v387_v49, %v392_v57  ;;  %v3339_v8 = vsel %vm385_vm1, %v392_v57, %v396_v58  ;;  %v3344_v10 = vsel %vm697_vm2, %v699_v53, %v704_v59 }
 0x105   :  { %v357_v5 = vld [vmem:[#allocation2] sm:$0xfe]  ;;  %v3347_v11 = vsel %vm224_vm0, %v232_v60, %v233_v54  ;;  %254 = vst [vmem:[#allocation2 + $0x50] sm:$0xfe] %v232_v60  ;;  %641 = vmatmul.mubr.f32.vlgmr.msra.gmra.mrb[0].mxu0 %v309_v1  ;;  %v188_v12 = vadd.f32 %v1801_v31, %v187_v3  ;;  %v3360_v20 = vsel %vm697_vm2, %v704_v59, %v708_v0  ;;  %v360_v31 = vld [vmem:[#allocation2 + $0x48] sm:$0x1] }
 0x106   :  { %v386_v13 = vrot.slane %v357_v5, 1  ;;  %v237_v15 = vrot.slane %v193_v2, 7  ;;  %645 = vmatprep.mubr.f32.mxu0 %v3259_v4  ;;  %v405_v32 = vrot.slane %v3347_v11, 1  ;;  %v717_v35 = vrot.slane %v3347_v11, 2  ;;  %v1840_v60 = vld [vmem:[%s3904_s4 + $0x230] sm:$0xff]  ;;  %v318_v1 = vld [vmem:[#allocation2 + $0x58] sm:$0xff] }
 0x107   :  { %v235_v22 = vrot.slane %v188_v12, 7  ;;  %v402_v44 = vrot.slane %v360_v31, 1  ;;  %v359_v52 = vld [vmem:[#allocation2 + $0x40] sm:$0x1]  ;;  %v407_v61 = vrot.slane %v362_v45, 1 }
 0x108   :  { %v388_v23 = vsel %vm385_vm1, %v386_v13, %v387_v49  ;;  %258 = vst [vmem:[#allocation2 + $0x90] sm:$0x1] %v237_v15  ;;  %v1857_v49 = vld [vmem:[%s3904_s4 + $0x2b8] sm:$0xff]  ;;  %v400_v3 = vrot.slane %v359_v52, 1  ;;  %v1858_v5 = vld [vmem:[%s3904_s4 + $0x2c0] sm:$0xff] }
 0x109   :  { %536 = vmatmul.mubr.f32.vlgmr.msra.gmra.mrb[8].mxu1 %v388_v23  ;;  %v3374_v33 = vsel %vm224_vm0, %v233_v54, %v235_v22  ;;  %v3377_v34 = vsel %vm224_vm0, %v235_v22, %v237_v15  ;;  %646 = vmatmul.mubr.f32.gmra.mrb[2].mxu0 %v3308_v41  ;;  %v403_v63 = vsel %vm385_vm1, %v398_v19, %v402_v44  ;;  %v1843_v15 = vld [vmem:[%s3904_s4 + $0x248] sm:$0xff]  ;;  %v412_v22 = vrot.slane %v3299_v29, 1  ;;  %v1860_v23 = vld [vmem:[%s3904_s4 + $0x2d0] sm:$0xff]  ;;  %v1865_v52 = vld [vmem:[%s3904_s4 + $0x2f8] sm:$0xff] }
 0x10a   :  { %2649 = vmatpush3.bf16.msra.mxu1 %v2648_v14  ;;  %540 = vmatprep.mubr.f32.mxu1 %v395_v25  ;;  %v410_v39 = vrot.slane %v3374_v33, 1  ;;  %v414_v40 = vrot.slane %v3377_v34, 1  ;;  %v722_v46 = vrot.slane %v3374_v33, 2  ;;  %v726_v47 = vrot.slane %v3377_v34, 2  ;;  %v1861_v25 = vld [vmem:[%s3904_s4 + $0x2d8] sm:$0xff]  ;;  %v1847_v44 = vld [vmem:[%s3904_s4 + $0x268] sm:$0xff] }
 0x10b   :  { %650 = vmatprep.mubr.f32.mxu0 %v3278_v18  ;;  %2651 = vmatprep.subr.bf16.mxu1 %v2650_v26  ;;  %v2658_v2 = vpack.c.bf16 %v1857_v49, %v1856_v48  ;;  %v409_v14 = vsel %vm385_vm1, %v407_v61, %v408_v62  ;;  %v401_v16 = vsel %vm385_vm1, %v396_v58, %v400_v3  ;;  %v1844_v58 = vld [vmem:[%s3904_s4 + $0x250] sm:$0xff]  ;;  %v681_v3 = vld [vmem:[#allocation2] sm:$0xfc] }
 0x10c   :  { %v3402_v54 = vsel %vm385_vm1, %v405_v32, %v410_v39  ;;  %v3407_v55 = vsel %vm385_vm1, %v410_v39, %v414_v40  ;;  %v3413_v57 = vsel %vm697_vm2, %v717_v35, %v722_v46  ;;  %v3418_v59 = vsel %vm697_vm2, %v722_v46, %v726_v47  ;;  %v317_v13 = vld [vmem:[#allocation2 + $0x50] sm:$0xff]  ;;  %v364_v39 = vld [vmem:[#allocation2 + $0x98] sm:$0x1] }
 0x10d   :  { %541 = vmatmul.mubr.f32.gmra.mrb[10].mxu1 %v393_v7  ;;  %651 = vmatmul.mubr.f32.gmra.mrb[4].mxu0 %v3312_v50  ;;  %v1841_v50 = vld [vmem:[%s3904_s4 + $0x238] sm:$0xff]  ;;  %v361_v7 = vld [vmem:[#allocation2 + $0x50] sm:$0xfe]  ;;  %v2662_v17 = vpack.c.bf16 %v1859_v6, %v1858_v5  ;;  %v413_v31 = vsel %vm385_vm1, %v408_v62, %v412_v22  ;;  %v2670_v46 = vpack.c.bf16 %v1863_v38, %v1862_v37  ;;  %v420_v48 = vrot.slane %v364_v39, 1 }
 0x10e   :  { %2653 = vmatpush3.bf16.msra.mxu1 %v2652_v9  ;;  %545 = vmatprep.mubr.f32.mxu1 %v399_v36  ;;  %v2660_v12 = vpack.c.bf16 %v1841_v50, %v1840_v60  ;;  %v404_v19 = vrot.slane %v361_v7, 1  ;;  %v2666_v9 = vpack.c.bf16 %v1861_v25, %v1860_v23  ;;  %v416_v36 = vrot.slane %v3302_v30, 1  ;;  %v1864_v49 = vld [vmem:[%s3904_s4 + $0x2f0] sm:$0xff]  ;;  %v51_v39 = vld [vmem:[%s3907_s12 + $0x38] sm:$0xff] }
 0x10f   :  { %655 = vmatprep.mubr.f32.mxu0 %v3284_v21  ;;  %2655 = vmatprep.subr.bf16.mxu1 %v2654_v43  ;;  %v2668_v43 = vpack.c.bf16 %v1845_v27, %v1844_v58  ;;  %v363_v60 = vld [vmem:[#allocation2 + $0x90] sm:$0x1]  ;;  %v2674_v61 = vpack.c.bf16 %v1865_v52, %v1864_v49  ;;  %v706_v7 = vrot.slane %v3278_v18, 2  ;;  %v685_v41 = vld [vmem:[#allocation2 + $0x50] sm:$0xfc]  ;;  %v724_v23 = vrot.slane %v3299_v29, 2 }
 0x110   :  { %v406_v28 = vsel %vm385_vm1, %v404_v19, %v405_v32  ;;  %v1846_v32 = vld [vmem:[%s3904_s4 + $0x260] sm:$0xff]  ;;  %v417_v45 = vsel %vm385_vm1, %v412_v22, %v416_v36  ;;  %v1848_v62 = vld [vmem:[%s3904_s4 + $0x270] sm:$0xff]  ;;  %v716_v25 = vrot.slane %v685_v41, 2  ;;  %v688_v58 = vld [vmem:[#allocation2 + $0x98] sm:$0x3] }
 0x111   :  { %546 = vmatmul.mubr.f32.gmra.mrb[12].mxu1 %v3339_v8  ;;  %656 = vmatmul.mubr.f32.gmra.mrb[6].mxu0 %v3315_v51  ;;  %v1842_v8 = vld [vmem:[%s3904_s4 + $0x240] sm:$0xff]  ;;  %v2672_v50 = vpack.c.bf16 %v1847_v44, %v1846_v32  ;;  %v732_v27 = vrot.slane %v688_v58, 2  ;;  %v687_v51 = vld [vmem:[#allocation2 + $0x90] sm:$0x3]  ;;  %v53_v44 = vld [vmem:[%s3907_s12 + $0x48] sm:$0xff] }
 0x112   :  { %2657 = vmatpush3.bf16.msra.mxu1 %v2656_v56  ;;  %550 = vmatprep.mubr.f32.mxu1 %v403_v63  ;;  %v2664_v26 = vpack.c.bf16 %v1843_v15, %v1842_v8  ;;  %v682_v56 = vld [vmem:[#allocation2 + $0x8] sm:$0xfc]  ;;  %v1849_v63 = vld [vmem:[%s3904_s4 + $0x278] sm:$0xff]  ;;  %v684_v8 = vld [vmem:[#allocation2 + $0x48] sm:$0x3] }
 0x113   :  { %660 = vmatprep.mubr.f32.mxu0 %v318_v1  ;;  %2659 = vmatprep.subr.bf16.mxu1 %v2658_v2  ;;  %v701_v1 = vrot.slane %v682_v56, 2  ;;  %v418_v2 = vrot.slane %v363_v60, 1  ;;  %v2676_v5 = vpack.c.bf16 %v1849_v63, %v1848_v62  ;;  %v714_v15 = vrot.slane %v684_v8, 2  ;;  %v50_v38 = vld [vmem:[%s3907_s12 + $0x30] sm:$0xff]  ;;  %v52_v32 = vld [vmem:[%s3907_s12 + $0x40] sm:$0xff]  ;;  %v57_v56 = vld [vmem:[%s3907_s12 + $0x68] sm:$0xff] }
 0x114   :  { %v56_v52 = vld [vmem:[%s3907_s12 + $0x60] sm:$0xff] }
 0x115   :  { %551 = vmatmul.mubr.f32.gmra.mrb[14].mxu1 %v401_v16  ;;  %661 = vmatmul.mubr.f32.gmra.mrb[8].mxu0 %v317_v13  ;;  %v710_v13 = vrot.slane %v3284_v21, 2  ;;  %v686_v16 = vld [vmem:[#allocation2 + $0x58] sm:$0xfc]  ;;  %v720_v21 = vrot.slane %v3290_v24, 2  ;;  %v3612_v60 = vpack.c.bf16 %v57_v56, %v56_v52 }
 0x116   :  { %2661 = vmatpush3.bf16.msra.mxu1 %v2660_v12  ;;  %555 = vmatprep.mubr.f32.mxu1 %v409_v14  ;;  %v698_v12 = vrot.slane %v681_v3, 2  ;;  %v719_v19 = vrot.slane %v686_v16, 2 }
 0x117   :  { %665 = vmatprep.mubr.f32.mxu0 %v3290_v24  ;;  %2663 = vmatprep.subr.bf16.mxu1 %v2662_v17  ;;  %v711_v18 = vsel %vm697_vm2, %v706_v7, %v710_v13  ;;  %v715_v17 = vsel %vm697_vm2, %v710_v13, %v714_v15  ;;  %v728_v24 = vrot.slane %v3302_v30, 2 }
 0x118   :  { %v700_v14 = vsel %vm697_vm2, %v698_v12, %v699_v53  ;;  %v721_v53 = vsel %vm697_vm2, %v719_v19, %v720_v21 }
 0x119   :  { %556 = vmatmul.mubr.f32.gmra.mrb[16].mxu1 %v406_v28  ;;  %666 = vmatmul.mubr.f32.gmra.mrb[10].mxu0 %v3347_v11  ;;  %v730_v28 = vrot.slane %v687_v51, 2  ;;  %v44_v11 = vld [vmem:[%s3907_s12] sm:$0xff] }
 0x11a   :  { %2665 = vmatpush3.bf16.msra.mxu1 %v2664_v26  ;;  %560 = vmatprep.mubr.f32.mxu1 %v413_v31  ;;  %v725_v26 = vsel %vm697_vm2, %v720_v21, %v724_v23  ;;  %v2895_v31 = vmov 0.0|0.0  }
 0x11b   :  { %670 = vmatprep.mubr.f32.mxu0 %v3299_v29  ;;  %2667 = vmatprep.subr.bf16.mxu1 %v2666_v9  ;;  %v729_v29 = vsel %vm697_vm2, %v724_v23, %v728_v24  ;;  %v48_v9 = vld [vmem:[%s3907_s12 + $0x20] sm:$0xff] }
 0x11c   :  { %2678 = vmatprep.subr.bf16.mxu0 %v2895_v31 }
 0x11d   :  { %561 = vmatmul.mubr.f32.gmra.mrb[18].mxu1 %v3402_v54  ;;  %671 = vmatmul.mubr.f32.gmra.mrb[12].mxu0 %v3374_v33  ;;  %v702_v54 = vrot.slane %v3259_v4, 2  ;;  %v421_v33 = vsel %vm385_vm1, %v416_v36, %v420_v48  ;;  %v419_v4 = vsel %vm385_vm1, %v414_v40, %v418_v2  ;;  %v683_v40 = vld [vmem:[#allocation2 + $0x40] sm:$0x3]  ;;  %v49_v36 = vld [vmem:[%s3907_s12 + $0x28] sm:$0xff]  ;;  %v55_v48 = vld [vmem:[%s3907_s12 + $0x58] sm:$0xff] }
 0x11e   :  { %2669 = vmatpush3.bf16.msra.mxu1 %v2668_v43  ;;  %565 = vmatprep.mubr.f32.mxu1 %v417_v45  ;;  %v712_v22 = vrot.slane %v683_v40, 2  ;;  %v3564_v37 = vpack.c.bf16 %v49_v36, %v48_v9  ;;  %v3576_v43 = vpack.c.bf16 %v51_v39, %v50_v38  ;;  %v3588_v45 = vpack.c.bf16 %v53_v44, %v52_v32 }
 0x11f   :  { %675 = vmatprep.mubr.f32.mxu0 %v3302_v30  ;;  %2671 = vmatprep.subr.bf16.mxu1 %v2670_v46  ;;  %v703_v6 = vsel %vm697_vm2, %v701_v1, %v702_v54  ;;  %v731_v30 = vsel %vm697_vm2, %v726_v47, %v730_v28  ;;  %v47_v47 = vld [vmem:[%s3907_s12 + $0x18] sm:$0xff]  ;;  %v54_v46 = vld [vmem:[%s3907_s12 + $0x50] sm:$0xff] }
 0x120   :  { %v3600_v49 = vpack.c.bf16 %v55_v48, %v54_v46 }
 0x121   :  { %566 = vmatmul.mubr.f32.gmra.mrb[20].mxu1 %v3407_v55  ;;  %676 = vmatmul.mubr.f32.gmra.mrb[14].mxu0 %v3377_v34  ;;  %v707_v55 = vsel %vm697_vm2, %v702_v54, %v706_v7  ;;  %v46_v34 = vld [vmem:[%s3907_s12 + $0x10] sm:$0xff] }
 0x122   :  { %2673 = vmatpush3.bf16.msra.mxu1 %v2672_v50  ;;  %570 = vmatprep.mubr.f32.mxu1 %v421_v33  ;;  %v58_v50 = vld [vmem:[%s3907_s12 + $0x70] sm:$0xff] }
 0x123   :  { %2675 = vmatprep.subr.bf16.mxu1 %v2674_v61  ;;  %v59_v61 = vld [vmem:[%s3907_s12 + $0x78] sm:$0xff]  ;;  %2310 = vmatprep.mubr.msk.f32.mxu0 %vm2896_vm3, %v2894_v42 }
 0x124   :  { %v3624_v62 = vpack.c.bf16 %v59_v61, %v58_v50 }
 0x125   :  { %571 = vmatmul.mubr.f32.gmra.mrb[22].mxu1 %v419_v4 }
 0x126   :  { %2677 = vmatpush3.bf16.msra.mxu1 %v2676_v5  ;;  %847 = vmatprep.mubr.f32.mxu1 %v703_v6 }
 0x127   :  { %2702 = vmatprep.subr.bf16.mxu1 %v2895_v31 }
 0x129   :  { %848 = vmatmul.mubr.f32.vlgmr.msra.gmra.mrb[24].mxu1 %v700_v14 }
 0x12a   :  { %852 = vmatprep.mubr.f32.mxu1 %v707_v55 }
 0x12d   :  { %853 = vmatmul.mubr.f32.gmra.mrb[26].mxu1 %v3344_v10  ;;  %v713_v10 = vsel %vm697_vm2, %v708_v0, %v712_v22  ;;  %v733_v0 = vsel %vm697_vm2, %v728_v24, %v732_v27 }
 0x12e   :  { %857 = vmatprep.mubr.f32.mxu1 %v711_v18 }
 0x131   :  { %858 = vmatmul.mubr.f32.gmra.mrb[28].mxu1 %v3360_v20  ;;  %v718_v20 = vsel %vm697_vm2, %v716_v25, %v717_v35  ;;  %v45_v35 = vld [vmem:[%s3907_s12 + $0x8] sm:$0xff] }
 0x132   :  { %862 = vmatprep.mubr.f32.mxu1 %v715_v17 }
 0x135   :  { %863 = vmatmul.mubr.f32.gmra.mrb[30].mxu1 %v713_v10 }
 0x136   :  { %867 = vmatprep.mubr.f32.mxu1 %v721_v53 }
 0x139   :  { %868 = vmatmul.mubr.f32.gmra.mrb[32].mxu1 %v718_v20 }
 0x13a   :  { %872 = vmatprep.mubr.f32.mxu1 %v725_v26 }
 0x13d   :  { %873 = vmatmul.mubr.f32.gmra.mrb[34].mxu1 %v3413_v57  ;;  %v3538_v57 = vpack.c.bf16 %v45_v35, %v44_v11 }
 0x13e   :  { %877 = vmatprep.mubr.f32.mxu1 %v729_v29 }
 0x13f   :  { %2680 = vmatpush3.bf16.msra.mxu0 %v3538_v57  ;;  %2704 = vmatpush3.bf16.msra.mxu1 %v3538_v57 }
 0x140   :  { %2681 = vmatprep.subr.bf16.mxu0 %v2895_v31  ;;  %2705 = vmatprep.subr.bf16.mxu1 %v2895_v31 }
 0x141   :  { %878 = vmatmul.mubr.f32.gmra.mrb[36].mxu1 %v3418_v59  ;;  %v3552_v59 = vpack.c.bf16 %v47_v47, %v46_v34 }
 0x142   :  { %882 = vmatprep.mubr.f32.mxu1 %v733_v0 }
 0x143   :  { %2683 = vmatpush3.bf16.msra.mxu0 %v3552_v59  ;;  %2707 = vmatpush3.bf16.msra.mxu1 %v3552_v59 }
 0x144   :  { %2684 = vmatprep.subr.bf16.mxu0 %v2895_v31  ;;  %2708 = vmatprep.subr.bf16.mxu1 %v2895_v31 }
 0x145   :  { %883 = vmatmul.mubr.f32.gmra.mrb[38].mxu1 %v731_v30 }
 0x146   :  { %2345 = vmatprep.mubr.msk.f32.mxu1 %vm2896_vm3, %v2894_v42 }
 0x147   :  { %2686 = vmatpush3.bf16.msra.mxu0 %v3564_v37  ;;  %2710 = vmatpush3.bf16.msra.mxu1 %v3564_v37 }
 0x148   :  { %2687 = vmatprep.subr.bf16.mxu0 %v2895_v31  ;;  %2711 = vmatprep.subr.bf16.mxu1 %v2895_v31 }
 0x14b   :  { %2689 = vmatpush3.bf16.msra.mxu0 %v3576_v43  ;;  %2713 = vmatpush3.bf16.msra.mxu1 %v3576_v43 }
 0x14c   :  { %2690 = vmatprep.subr.bf16.mxu0 %v2895_v31  ;;  %2714 = vmatprep.subr.bf16.mxu1 %v2895_v31 }
 0x14f   :  { %2692 = vmatpush3.bf16.msra.mxu0 %v3588_v45  ;;  %2716 = vmatpush3.bf16.msra.mxu1 %v3588_v45 }
 0x150   :  { %2693 = vmatprep.subr.bf16.mxu0 %v2895_v31  ;;  %2717 = vmatprep.subr.bf16.mxu1 %v2895_v31 }
 0x153   :  { %2695 = vmatpush3.bf16.msra.mxu0 %v3600_v49  ;;  %2719 = vmatpush3.bf16.msra.mxu1 %v3600_v49 }
 0x154   :  { %2696 = vmatprep.subr.bf16.mxu0 %v2895_v31  ;;  %2720 = vmatprep.subr.bf16.mxu1 %v2895_v31 }
 0x157   :  { %2698 = vmatpush3.bf16.msra.mxu0 %v3612_v60  ;;  %2722 = vmatpush3.bf16.msra.mxu1 %v3612_v60 }
 0x158   :  { %2699 = vmatprep.subr.bf16.mxu0 %v2895_v31  ;;  %2723 = vmatprep.subr.bf16.mxu1 %v2895_v31 }
 0x15b   :  { %2701 = vmatpush3.bf16.msra.mxu0 %v3624_v62  ;;  %2725 = vmatpush3.bf16.msra.mxu1 %v3624_v62 }
 0x15c   :  { %2822 = vmatprep.subr.bf16.mxu1 %v2895_v31 }
 0x1d8   :  { %v2014_v63 = vpop.f32.mrb[0].mxu0 }
 0x1d9   :  { %v2015_v1 = vpop.f32.mrb[1].mxu0 }
 0x1da   :  { %v2016_v54 = vadd.f32 %v2015_v1, %v2014_v63 }
 0x1dc   :  { %v1958_v33 = vpop.f32.mrb[8].mxu1  ;;  %v2017_v2 = vpop.f32.mrb[2].mxu0 }
 0x1dd   :  { %v1959_v3 = vpop.f32.mrb[9].mxu1  ;;  %v2018_v6 = vpop.f32.mrb[3].mxu0 }
 0x1de   :  { %v1960_v5 = vadd.f32 %v1959_v3, %v1958_v33  ;;  %v2019_v7 = vadd.f32 %v2018_v6, %v2017_v2 }
 0x1e0   :  { %v643_v4 = vadd.f32 %v2016_v54, %v1960_v5  ;;  %v1961_v12 = vpop.f32.mrb[10].mxu1  ;;  %v2020_v55 = vpop.f32.mrb[4].mxu0 }
 0x1e1   :  { %v1962_v13 = vpop.f32.mrb[11].mxu1  ;;  %v2021_v14 = vpop.f32.mrb[5].mxu0 }
 0x1e2   :  { %v1963_v42 = vadd.f32 %v1962_v13, %v1961_v12  ;;  %v2022_v8 = vadd.f32 %v2021_v14, %v2020_v55 }
 0x1e4   :  { %v648_v18 = vadd.f32 %v2019_v7, %v1963_v42  ;;  %v1964_v15 = vpop.f32.mrb[12].mxu1  ;;  %v2023_v16 = vpop.f32.mrb[6].mxu0 }
 0x1e5   :  { %v1965_v40 = vpop.f32.mrb[13].mxu1  ;;  %v2024_v19 = vpop.f32.mrb[7].mxu0 }
 0x1e6   :  { %v1966_v17 = vadd.f32 %v1965_v40, %v1964_v15  ;;  %v2025_v21 = vadd.f32 %v2024_v19, %v2023_v16 }
 0x1e8   :  { %v653_v22 = vadd.f32 %v2022_v8, %v1966_v17  ;;  %v1967_v41 = vpop.f32.mrb[14].mxu1  ;;  %v2026_v53 = vpop.f32.mrb[8].mxu0 }
 0x1e9   :  { %v1968_v23 = vpop.f32.mrb[15].mxu1  ;;  %v2027_v25 = vpop.f32.mrb[9].mxu0 }
 0x1ea   :  { %v1969_v10 = vadd.f32 %v1968_v23, %v1967_v41  ;;  %v2028_v26 = vadd.f32 %v2027_v25, %v2026_v53 }
 0x1ec   :  { %v658_v24 = vadd.f32 %v2025_v21, %v1969_v10  ;;  %v1970_v20 = vpop.f32.mrb[16].mxu1  ;;  %v2029_v58 = vpop.f32.mrb[10].mxu0  ;;  %v1866_v21 = vld [vmem:[%s3908_s5] ss:$0 sm:$0xff] }
 0x1ed   :  { %v1971_v29 = vpop.f32.mrb[17].mxu1  ;;  %v2030_v51 = vpop.f32.mrb[11].mxu0 }
 0x1ee   :  { %v1972_v27 = vadd.f32 %v1971_v29, %v1970_v20  ;;  %v2031_v0 = vadd.f32 %v2030_v51, %v2029_v58 }
 0x1f0   :  { %v663_v28 = vadd.f32 %v2028_v26, %v1972_v27  ;;  %v1973_v30 = vpop.f32.mrb[18].mxu1  ;;  %v2032_v11 = vpop.f32.mrb[12].mxu0 }
 0x1f1   :  { %v1974_v35 = vpop.f32.mrb[19].mxu1  ;;  %v2033_v47 = vpop.f32.mrb[13].mxu0 }
 0x1f2   :  { %v1975_v34 = vadd.f32 %v1974_v35, %v1973_v30  ;;  %v2034_v9 = vadd.f32 %v2033_v47, %v2032_v11 }
 0x1f4   :  { %v668_v36 = vadd.f32 %v2031_v0, %v1975_v34  ;;  %v1976_v38 = vpop.f32.mrb[20].mxu1  ;;  %v2035_v39 = vpop.f32.mrb[14].mxu0 }
 0x1f5   :  { %v1977_v32 = vpop.f32.mrb[21].mxu1  ;;  %v2036_v46 = vpop.f32.mrb[15].mxu0 }
 0x1f6   :  { %v1978_v44 = vadd.f32 %v1977_v32, %v1976_v38  ;;  %v2037_v48 = vadd.f32 %v2036_v46, %v2035_v39 }
 0x1f8   :  { %v673_v52 = vadd.f32 %v2034_v9, %v1978_v44  ;;  %v1979_v56 = vpop.f32.mrb[22].mxu1 }
 0x1f9   :  { %v1980_v50 = vpop.f32.mrb[23].mxu1 }
 0x1fa   :  { %v1981_v61 = vadd.f32 %v1980_v50, %v1979_v56 }
 0x1fc   :  { %v678_v63 = vadd.f32 %v2037_v48, %v1981_v61  ;;  %v2070_v1 = vpop.f32.mrb[24].mxu1 }
 0x1fd   :  { %v2071_v54 = vpop.f32.mrb[25].mxu1 }
 0x1fe   :  { %v2072_v33 = vadd.f32 %v2071_v54, %v2070_v1  ;;  %v996_v54 = vlaneseq }
 0x200   :  { %v888_v2 = vadd.f32 %v2072_v33, %v643_v4  ;;  %v2073_v3 = vpop.f32.mrb[26].mxu1  ;;  %v997_v33 = vshrl.u32 %v996_v54, 7  ;;  %v1881_v54 = vld [vmem:[%s3909_s8 + $0xe8] sm:$0xff] }
 0x201   :  { %v2074_v5 = vpop.f32.mrb[27].mxu1 }
 0x202   :  { %v2075_v6 = vadd.f32 %v2074_v5, %v2073_v3 }
 0x204   :  { %v889_v7 = vadd.f32 %v2075_v6, %v648_v18  ;;  %v2076_v12 = vpop.f32.mrb[28].mxu1  ;;  %v903_v18 = vadd.f32 %v1866_v21, %v888_v2 }
 0x205   :  { %v2077_v55 = vpop.f32.mrb[29].mxu1 }
 0x206   :  { %v2078_v13 = vadd.f32 %v2077_v55, %v2076_v12  ;;  %v904_v4 = vadd.f32 %v1866_v21, %v889_v7 }
 0x208   :  { %v890_v42 = vadd.f32 %v2078_v13, %v653_v22  ;;  %v2079_v14 = vpop.f32.mrb[30].mxu1  ;;  %v913_v26 = vadd.f32 %v904_v4, %v903_v18 }
 0x209   :  { %v2080_v8 = vpop.f32.mrb[31].mxu1 }
 0x20a   :  { %v2081_v15 = vadd.f32 %v2080_v8, %v2079_v14  ;;  %v905_v10 = vadd.f32 %v1866_v21, %v890_v42 }
 0x20c   :  { %v891_v16 = vadd.f32 %v2081_v15, %v658_v24  ;;  %v2082_v40 = vpop.f32.mrb[32].mxu1  ;;  %v914_v24 = vadd.f32 %v913_v26, %v905_v10 }
 0x20d   :  { %v2083_v17 = vpop.f32.mrb[33].mxu1 }
 0x20e   :  { %v2084_v19 = vadd.f32 %v2083_v17, %v2082_v40  ;;  %v906_v22 = vadd.f32 %v1866_v21, %v891_v16 }
 0x210   :  { %v892_v41 = vadd.f32 %v2084_v19, %v663_v28  ;;  %v2085_v53 = vpop.f32.mrb[34].mxu1  ;;  %v915_v0 = vadd.f32 %v914_v24, %v906_v22 }
 0x211   :  { %v2086_v23 = vpop.f32.mrb[35].mxu1 }
 0x212   :  { %v2087_v25 = vadd.f32 %v2086_v23, %v2085_v53  ;;  %v907_v27 = vadd.f32 %v1866_v21, %v892_v41 }
 0x214   :  { %v893_v20 = vadd.f32 %v2087_v25, %v668_v36  ;;  %v2088_v58 = vpop.f32.mrb[36].mxu1  ;;  %v916_v47 = vadd.f32 %v915_v0, %v907_v27  ;;  %v1868_v0 = vld [vmem:[%s3909_s8 + $0x80] sm:$0xff] }
 0x215   :  { %v2089_v29 = vpop.f32.mrb[37].mxu1 }
 0x216   :  { %v2090_v51 = vadd.f32 %v2089_v29, %v2088_v58  ;;  %v908_v30 = vadd.f32 %v1866_v21, %v893_v20 }
 0x218   :  { %v894_v11 = vadd.f32 %v2090_v51, %v673_v52  ;;  %v2091_v35 = vpop.f32.mrb[38].mxu1  ;;  %v917_v38 = vadd.f32 %v916_v47, %v908_v30  ;;  %v3636_v52 = vsub.s32 0, %v997_v33  ;;  %v3672_v51 = vld [vmem:[#allocation3] sm:$0xff] }
 0x219   :  { %v2092_v34 = vpop.f32.mrb[39].mxu1 }
 0x21a   :  { %v909_v28 = vadd.f32 %v1866_v21, %v894_v11  ;;  %v2093_v9 = vadd.f32 %v2092_v34, %v2091_v35  ;;  %v1870_v35 = vld [vmem:[%s3909_s8 + $0x90] sm:$0xff]  ;;  %v1871_v34 = vld [vmem:[%s3909_s8 + $0x98] sm:$0xff] }
 0x21b   :  { %v2730_v47 = vpack.c.bf16 %v1871_v34, %v1870_v35 }
 0x21c   :  { %v895_v39 = vadd.f32 %v2093_v9, %v678_v63  ;;  %v918_v32 = vadd.f32 %v917_v38, %v909_v28  ;;  %v1873_v9 = vld [vmem:[%s3909_s8 + $0xa8] sm:$0xff] }
 0x21e   :  { %v910_v44 = vadd.f32 %v1866_v21, %v895_v39  ;;  %v1874_v39 = vld [vmem:[%s3909_s8 + $0xb0] sm:$0xff] }
 0x220   :  { %v919_v46 = vadd.f32 %v918_v32, %v910_v44  ;;  %v1875_v32 = vld [vmem:[%s3909_s8 + $0xb8] sm:$0xff] }
 0x222   :  { %v920_v48 = vrot.slane %v919_v46, 4 }
 0x224   :  { %v921_v36 = vadd.f32 %v920_v48, %v919_v46  ;;  %v1876_v46 = vld [vmem:[%s3909_s8 + $0xc0] sm:$0xff]  ;;  %v1877_v48 = vld [vmem:[%s3909_s8 + $0xc8] sm:$0xff] }
 0x226   :  { %v922_v56 = vrot.slane %v921_v36, 2 }
 0x228   :  { %v923_v50 = vadd.f32 %v922_v56, %v921_v36  ;;  %v2742_v36 = vpack.c.bf16 %v1877_v48, %v1876_v46  ;;  %v1878_v56 = vld [vmem:[%s3909_s8 + $0xd0] sm:$0xff]  ;;  %v1168_v48 = vld [vmem:[%s3909_s8 + $0x38] sm:$0xff] }
 0x229   :  { %v1167_v46 = vld [vmem:[%s3909_s8 + $0x30] sm:$0xff] }
 0x22a   :  { %v924_v61 = vrot.slane %v923_v50, 1 }
 0x22c   :  { %v925_v1 = vadd.f32 %v924_v61, %v923_v50  ;;  %v1879_v50 = vld [vmem:[%s3909_s8 + $0xd8] sm:$0xff] }
 0x22d   :  { %v2746_v61 = vpack.c.bf16 %v1879_v50, %v1878_v56  ;;  %v1169_v56 = vld [vmem:[%s3909_s8 + $0x40] sm:$0xff]  ;;  %v1170_v50 = vld [vmem:[%s3909_s8 + $0x48] sm:$0xff] }
 0x22e   :  { %2311 = vmatmul.mubr.f32.vlgmr.msra.gmra.mrb[16].mxu0 %v925_v1  ;;  %v1880_v1 = vld [vmem:[%s3909_s8 + $0xe0] sm:$0xff] }
 0x22f   :  { %v2750_v33 = vpack.c.bf16 %v1881_v54, %v1880_v1  ;;  %v1171_v1 = vld [vmem:[%s3909_s8 + $0x50] sm:$0xff]  ;;  %v1172_v54 = vld [vmem:[%s3909_s8 + $0x58] sm:$0xff] }
 0x301   :  { %v992_v2 = vpop.f32.mrb[16].mxu0 }
 0x302   :  { %v999_v3 = vrot.slane %v992_v2, %v3636_v52  ;;  %v2312_v5 = vpop.f32.mrb[17].mxu0  ;;  %v1882_v2 = vld [vmem:[%s3909_s8 + $0xf0] sm:$0xff] }
 0x304   :  { %v3639_v6 = vsub.f32 %v903_v18, %v999_v3  ;;  %v3641_v63 = vsub.f32 %v904_v4, %v999_v3  ;;  %v3643_v7 = vsub.f32 %v905_v10, %v999_v3  ;;  %v3645_v12 = vsub.f32 %v906_v22, %v999_v3 }
 0x305   :  { %v3651_v42 = vsub.f32 %v907_v27, %v999_v3  ;;  %v3655_v15 = vsub.f32 %v908_v30, %v999_v3  ;;  %v3659_v17 = vsub.f32 %v909_v28, %v999_v3  ;;  %v3663_v4 = vsub.f32 %v910_v44, %v999_v3  ;;  %v1869_v30 = vld [vmem:[%s3909_s8 + $0x88] sm:$0xff]  ;;  %v1872_v28 = vld [vmem:[%s3909_s8 + $0xa0] sm:$0xff]  ;;  %v1883_v3 = vld [vmem:[%s3909_s8 + $0xf8] sm:$0xff] }
 0x306   :  { %v1008_v55 = vmul.f32 %v3639_v6, %v3639_v6  ;;  %v1009_v13 = vmul.f32 %v3641_v63, %v3641_v63  ;;  %v1010_v14 = vmul.f32 %v3643_v7, %v3643_v7  ;;  %v1011_v16 = vmul.f32 %v3645_v12, %v3645_v12 }
 0x307   :  { %v1012_v19 = vmul.f32 %v3651_v42, %v3651_v42  ;;  %v1013_v41 = vmul.f32 %v3655_v15, %v3655_v15  ;;  %v1014_v23 = vmul.f32 %v3659_v17, %v3659_v17  ;;  %v1015_v10 = vmul.f32 %v3663_v4, %v3663_v4 }
 0x308   :  { %v1016_v8 = vadd.f32 %v1009_v13, %v1008_v55  ;;  %v2726_v11 = vpack.c.bf16 %v1869_v30, %v1868_v0  ;;  %v2734_v38 = vpack.c.bf16 %v1873_v9, %v1872_v28  ;;  %v2738_v44 = vpack.c.bf16 %v1875_v32, %v1874_v39  ;;  %v1161_v55 = vld [vmem:[%s3909_s8] sm:$0xff]  ;;  %v1162_v13 = vld [vmem:[%s3909_s8 + $0x8] sm:$0xff] }
 0x309   :  { %v2754_v5 = vpack.c.bf16 %v1883_v3, %v1882_v2  ;;  %v2778_v2 = vpack.c.bf16 %v1172_v54, %v1171_v1  ;;  %v1173_v3 = vld [vmem:[%s3909_s8 + $0x60] sm:$0xff] }
 0x30a   :  { %v1017_v40 = vadd.f32 %v1016_v8, %v1010_v14  ;;  %2727 = vmatprep.subr.bf16.mxu0 %v2726_v11  ;;  %v2758_v14 = vpack.c.bf16 %v1162_v13, %v1161_v55  ;;  %v1175_v13 = vld [vmem:[%s3909_s8 + $0x70] sm:$0xff] }
 0x30b   :  { %2729 = vmatpush3.bf16.msra.mxu0 %v2726_v11 }
 0x30c   :  { %v1018_v21 = vadd.f32 %v1017_v40, %v1011_v16  ;;  %2731 = vmatprep.subr.bf16.mxu0 %v2730_v47 }
 0x30e   :  { %v1019_v53 = vadd.f32 %v1018_v21, %v1012_v19  ;;  %v911_v19 = vld [vmem:[%s3910_s6] sm:$0x1] }
 0x30f   :  { %2733 = vmatpush3.bf16.msra.mxu0 %v2730_v47 }
 0x310   :  { %v1020_v18 = vadd.f32 %v1019_v53, %v1013_v41  ;;  %2735 = vmatprep.subr.bf16.mxu0 %v2734_v38  ;;  %v1163_v53 = vld [vmem:[%s3909_s8 + $0x10] sm:$0xff] }
 0x312   :  { %v1021_v25 = vadd.f32 %v1020_v18, %v1014_v23  ;;  %v1164_v23 = vld [vmem:[%s3909_s8 + $0x18] sm:$0xff] }
 0x313   :  { %2737 = vmatpush3.bf16.msra.mxu0 %v2734_v38 }
 0x314   :  { %v1022_v26 = vadd.f32 %v1021_v25, %v1015_v10  ;;  %2739 = vmatprep.subr.bf16.mxu0 %v2738_v44  ;;  %v1867_v10 = vld [vmem:[%s3911_s7] ss:$0 sm:$0xff]  ;;  %v2762_v25 = vpack.c.bf16 %v1164_v23, %v1163_v53 }
 0x316   :  { %v1023_v22 = vrot.slane %v1022_v26, 4 }
 0x317   :  { %2741 = vmatpush3.bf16.msra.mxu0 %v2738_v44 }
 0x318   :  { %v1024_v20 = vadd.f32 %v1023_v22, %v1022_v26  ;;  %2743 = vmatprep.subr.bf16.mxu0 %v2742_v36 }
 0x31a   :  { %v1025_v58 = vrot.slane %v1024_v20, 2 }
 0x31b   :  { %2745 = vmatpush3.bf16.msra.mxu0 %v2742_v36  ;;  %v2770_v36 = vpack.c.bf16 %v1168_v48, %v1167_v46 }
 0x31c   :  { %v1026_v29 = vadd.f32 %v1025_v58, %v1024_v20  ;;  %2747 = vmatprep.subr.bf16.mxu0 %v2746_v61 }
 0x31e   :  { %v1027_v24 = vrot.slane %v1026_v29, 1 }
 0x31f   :  { %2749 = vmatpush3.bf16.msra.mxu0 %v2746_v61  ;;  %v2774_v61 = vpack.c.bf16 %v1170_v50, %v1169_v56 }
 0x320   :  { %v1028_v27 = vadd.f32 %v1027_v24, %v1026_v29  ;;  %2751 = vmatprep.subr.bf16.mxu0 %v2750_v33 }
 0x322   :  { %2346 = vmatmul.mubr.f32.vlgmr.msra.gmra.mrb[40].mxu1 %v1028_v27 }
 0x323   :  { %2824 = vmatpush3.bf16.msra.mxu1 %v3538_v57  ;;  %2512 = vmatprep.mubr.msk.f32.mxu1 %vm2896_vm3, %v3672_v51 }
 0x324   :  { %2825 = vmatprep.subr.bf16.mxu1 %v2895_v31  ;;  %2753 = vmatpush3.bf16.msra.mxu0 %v2750_v33 }
 0x325   :  { %2755 = vmatprep.subr.bf16.mxu0 %v2754_v5 }
 0x327   :  { %2827 = vmatpush3.bf16.msra.mxu1 %v3552_v59 }
 0x328   :  { %2828 = vmatprep.subr.bf16.mxu1 %v2895_v31  ;;  %2757 = vmatpush3.bf16.msra.mxu0 %v2754_v5  ;;  %v1174_v5 = vld [vmem:[%s3909_s8 + $0x68] sm:$0xff] }
 0x329   :  { %2759 = vmatprep.subr.bf16.mxu0 %v2758_v14  ;;  %v2782_v55 = vpack.c.bf16 %v1174_v5, %v1173_v3 }
 0x32b   :  { %2830 = vmatpush3.bf16.msra.mxu1 %v3564_v37 }
 0x32c   :  { %2831 = vmatprep.subr.bf16.mxu1 %v2895_v31 }
 0x32f   :  { %2833 = vmatpush3.bf16.msra.mxu1 %v3576_v43 }
 0x330   :  { %2834 = vmatprep.subr.bf16.mxu1 %v2895_v31 }
 0x333   :  { %2836 = vmatpush3.bf16.msra.mxu1 %v3588_v45 }
 0x334   :  { %2837 = vmatprep.subr.bf16.mxu1 %v2895_v31 }
 0x337   :  { %2839 = vmatpush3.bf16.msra.mxu1 %v3600_v49 }
 0x338   :  { %2840 = vmatprep.subr.bf16.mxu1 %v2895_v31 }
 0x33b   :  { %2842 = vmatpush3.bf16.msra.mxu1 %v3612_v60 }
 0x33c   :  { %2843 = vmatprep.subr.bf16.mxu1 %v2895_v31 }
 0x33f   :  { %2845 = vmatpush3.bf16.msra.mxu1 %v3624_v62 }
 0x340   :  { %2846 = vmatprep.subr.bf16.mxu1 %v2895_v31 }
 0x3f5   :  { %v1095_v8 = vpop.f32.mrb[40].mxu1 }
 0x3f6   :  { %v1096_v16 = vadd.f32 1e-05, %v1095_v8  ;;  %v2347_v40 = vpop.f32.mrb[41].mxu1 }
 0x3f7   :  { %v1885_v40 = vld [vmem:[%s3909_s8 + $0x108] sm:$0xff] }
 0x3f8   :  { %2889 = vrsqrt.f32 %v1096_v16  ;;  %v1884_v16 = vld [vmem:[%s3909_s8 + $0x100] sm:$0xff] }
 0x402   :  { %v2890_v21 = vpop.eup %2889 }
 0x403   :  { %v1100_v41 = vmul.f32 %v2890_v21, %v911_v19  ;;  %v2790_v19 = vpack.c.bf16 %v1885_v40, %v1884_v16  ;;  %v1886_v21 = vld [vmem:[%s3909_s8 + $0x110] sm:$0xff] }
 0x405   :  { %v1104_v18 = vrot.slane %v1100_v41, %v3636_v52  ;;  %v1887_v41 = vld [vmem:[%s3909_s8 + $0x118] sm:$0xff] }
 0x406   :  { %v2794_v53 = vpack.c.bf16 %v1887_v41, %v1886_v21 }
 0x407   :  { %v1105_v26 = vmul.f32 %v1104_v18, %v3639_v6  ;;  %v1106_v22 = vmul.f32 %v1104_v18, %v3641_v63  ;;  %v1107_v20 = vmul.f32 %v1104_v18, %v3643_v7  ;;  %v1108_v58 = vmul.f32 %v1104_v18, %v3645_v12 }
 0x408   :  { %v1109_v29 = vmul.f32 %v1104_v18, %v3651_v42  ;;  %v1110_v24 = vmul.f32 %v1104_v18, %v3655_v15  ;;  %v1111_v27 = vmul.f32 %v1104_v18, %v3659_v17  ;;  %v1112_v0 = vmul.f32 %v1104_v18, %v3663_v4  ;;  %v1165_v17 = vld [vmem:[%s3909_s8 + $0x20] sm:$0xff]  ;;  %v1166_v4 = vld [vmem:[%s3909_s8 + $0x28] sm:$0xff] }
 0x409   :  { %v1119_v30 = vadd.f32 %v1867_v10, %v1105_v26  ;;  %v1120_v11 = vadd.f32 %v1867_v10, %v1106_v22  ;;  %v1121_v35 = vadd.f32 %v1867_v10, %v1107_v20  ;;  %v1122_v34 = vadd.f32 %v1867_v10, %v1108_v58  ;;  %v1888_v18 = vld [vmem:[%s3909_s8 + $0x120] sm:$0xff]  ;;  %v1890_v20 = vld [vmem:[%s3909_s8 + $0x130] sm:$0xff]  ;;  %v1891_v58 = vld [vmem:[%s3909_s8 + $0x138] sm:$0xff] }
 0x40a   :  { %v1123_v47 = vadd.f32 %v1867_v10, %v1109_v29  ;;  %v1124_v6 = vadd.f32 %v1867_v10, %v1110_v24  ;;  %v1125_v28 = vadd.f32 %v1867_v10, %v1111_v27  ;;  %v1126_v63 = vadd.f32 %v1867_v10, %v1112_v0  ;;  %v1889_v10 = vld [vmem:[%s3909_s8 + $0x128] sm:$0xff]  ;;  %v1892_v0 = vld [vmem:[%s3909_s8 + $0x140] sm:$0xff] }
 0x40b   :  { %v1127_v9 = vmax.f32 %v1119_v30, 0.0  ;;  %v1128_v7 = vmax.f32 %v1120_v11, 0.0  ;;  %v1129_v38 = vmax.f32 %v1121_v35, 0.0  ;;  %v1130_v12 = vmax.f32 %v1122_v34, 0.0  ;;  %v1893_v30 = vld [vmem:[%s3909_s8 + $0x148] sm:$0xff] }
 0x40c   :  { %v1131_v39 = vmax.f32 %v1123_v47, 0.0  ;;  %v1132_v42 = vmax.f32 %v1124_v6, 0.0  ;;  %v1133_v32 = vmax.f32 %v1125_v28, 0.0  ;;  %v1134_v15 = vmax.f32 %v1126_v63, 0.0  ;;  %v1894_v47 = vld [vmem:[%s3909_s8 + $0x150] sm:$0xff]  ;;  %v1895_v6 = vld [vmem:[%s3909_s8 + $0x158] sm:$0xff] }
 0x40d   :  { %1145 = vst [vmem:[#allocation3 + $0x1] sm:$0xff] %v1127_v9  ;;  %2380 = vmatprep.mubr.f32.mxu0 %v1127_v9  ;;  %1146 = vst [vmem:[#allocation3 + $0x9] sm:$0xff] %v1128_v7  ;;  %v2766_v44 = vpack.c.bf16 %v1166_v4, %v1165_v17  ;;  %v2798_v26 = vpack.c.bf16 %v1889_v10, %v1888_v18  ;;  %v2802_v24 = vpack.c.bf16 %v1891_v58, %v1890_v20  ;;  %v1896_v9 = vld [vmem:[%s3909_s8 + $0x160] sm:$0xff] }
 0x40e   :  { %1147 = vst [vmem:[#allocation3 + $0x11] sm:$0xff] %v1129_v38  ;;  %1148 = vst [vmem:[#allocation3 + $0x19] sm:$0xff] %v1130_v12  ;;  %2381 = vmatmul.mubr.f32.vlgmr.msra.gmra.mrb[18].mxu0 %v1128_v7  ;;  %v2806_v35 = vpack.c.bf16 %v1893_v30, %v1892_v0  ;;  %v2810_v63 = vpack.c.bf16 %v1895_v6, %v1894_v47  ;;  %v1897_v7 = vld [vmem:[%s3909_s8 + $0x168] sm:$0xff] }
 0x40f   :  { %1149 = vst [vmem:[#allocation3 + $0x29] sm:$0xff] %v1131_v39  ;;  %1150 = vst [vmem:[#allocation3 + $0x31] sm:$0xff] %v1132_v42  ;;  %2761 = vmatpush3.bf16.msra.mxu0 %v2758_v14  ;;  %2383 = vmatprep.mubr.f32.mxu0 %v1129_v38  ;;  %v1176_v14 = vld [vmem:[%s3909_s8 + $0x78] sm:$0xff]  ;;  %v2814_v38 = vpack.c.bf16 %v1897_v7, %v1896_v9 }
 0x410   :  { %1151 = vst [vmem:[#allocation3 + $0x39] sm:$0xff] %v1133_v32  ;;  %1152 = vst [vmem:[#allocation3 + $0x41] sm:$0xff] %v1134_v15  ;;  %2763 = vmatprep.subr.bf16.mxu0 %v2762_v25  ;;  %v2786_v8 = vpack.c.bf16 %v1176_v14, %v1175_v13 }
 0x412   :  { %2384 = vmatmul.mubr.f32.gmra.mrb[20].mxu0 %v1130_v12  ;;  %v1898_v12 = vld [vmem:[%s3909_s8 + $0x170] sm:$0xff] }
 0x413   :  { %2765 = vmatpush3.bf16.msra.mxu0 %v2762_v25  ;;  %2386 = vmatprep.mubr.f32.mxu0 %v1131_v39  ;;  %v1899_v39 = vld [vmem:[%s3909_s8 + $0x178] sm:$0xff] }
 0x414   :  { %2767 = vmatprep.subr.bf16.mxu0 %v2766_v44  ;;  %v1153_v33 = vld [vmem:[#allocation3] sm:$0xff]  ;;  %v1154_v23 = vld [vmem:[#allocation3 + $0x8] sm:$0xff] }
 0x415   :  { %v1155_v25 = vld [vmem:[#allocation3 + $0x10] sm:$0xff]  ;;  %v1156_v22 = vld [vmem:[#allocation3 + $0x18] sm:$0xff]  ;;  %v1412_v28 = vld [vmem:[#allocation3 + $0x2] sm:$0xff] }
 0x416   :  { %2387 = vmatmul.mubr.f32.gmra.mrb[22].mxu0 %v1132_v42  ;;  %v1157_v29 = vld [vmem:[#allocation3 + $0x28] sm:$0xff]  ;;  %v1158_v27 = vld [vmem:[#allocation3 + $0x30] sm:$0xff]  ;;  %v2818_v42 = vpack.c.bf16 %v1899_v39, %v1898_v12  ;;  %v1415_v17 = vld [vmem:[#allocation3 + $0x1a] sm:$0xff] }
 0x417   :  { %2769 = vmatpush3.bf16.msra.mxu0 %v2766_v44  ;;  %2389 = vmatprep.mubr.f32.mxu0 %v1133_v32  ;;  %v1159_v11 = vld [vmem:[#allocation3 + $0x38] sm:$0xff]  ;;  %v1160_v34 = vld [vmem:[#allocation3 + $0x40] sm:$0xff]  ;;  %v1413_v32 = vld [vmem:[#allocation3 + $0xa] sm:$0xff] }
 0x418   :  { %2771 = vmatprep.subr.bf16.mxu0 %v2770_v36  ;;  %v1416_v4 = vld [vmem:[#allocation3 + $0x2a] sm:$0xff]  ;;  %v1417_v44 = vld [vmem:[#allocation3 + $0x32] sm:$0xff]  ;;  %v1418_v46 = vld [vmem:[#allocation3 + $0x3a] sm:$0xff] }
 0x419   :  { %v1419_v48 = vld [vmem:[#allocation3 + $0x42] sm:$0xff] }
 0x41a   :  { %2390 = vmatmul.mubr.f32.gmra.mrb[24].mxu0 %v1134_v15  ;;  %v1414_v15 = vld [vmem:[#allocation3 + $0x12] sm:$0xff] }
 0x41b   :  { %2773 = vmatpush3.bf16.msra.mxu0 %v2770_v36  ;;  %2424 = vmatprep.mubr.f32.mxu0 %v1153_v33  ;;  %v1900_v36 = vld [vmem:[%s3912_s9] ss:$0 sm:$0xff] }
 0x41c   :  { %2775 = vmatprep.subr.bf16.mxu0 %v2774_v61 }
 0x41f   :  { %2777 = vmatpush3.bf16.msra.mxu0 %v2774_v61 }
 0x420   :  { %2779 = vmatprep.subr.bf16.mxu0 %v2778_v2 }
 0x423   :  { %2781 = vmatpush3.bf16.msra.mxu0 %v2778_v2 }
 0x424   :  { %2783 = vmatprep.subr.bf16.mxu0 %v2782_v55 }
 0x427   :  { %2785 = vmatpush3.bf16.msra.mxu0 %v2782_v55 }
 0x428   :  { %2787 = vmatprep.subr.bf16.mxu0 %v2786_v8 }
 0x42b   :  { %2789 = vmatpush3.bf16.msra.mxu0 %v2786_v8 }
 0x42c   :  { %2791 = vmatprep.subr.bf16.mxu0 %v2790_v19 }
 0x42e   :  { %2425 = vmatmul.mubr.f32.vlgmr.msra.gmra.mrb[18].mxu0 %v1154_v23 }
 0x42f   :  { %2427 = vmatprep.mubr.f32.mxu0 %v1155_v25  ;;  %2793 = vmatpush3.bf16.msra.mxu0 %v2790_v19 }
 0x430   :  { %2795 = vmatprep.subr.bf16.mxu0 %v2794_v53 }
 0x432   :  { %2428 = vmatmul.mubr.f32.gmra.mrb[20].mxu0 %v1156_v22 }
 0x433   :  { %2430 = vmatprep.mubr.f32.mxu0 %v1157_v29  ;;  %2797 = vmatpush3.bf16.msra.mxu0 %v2794_v53 }
 0x434   :  { %2799 = vmatprep.subr.bf16.mxu0 %v2798_v26 }
 0x436   :  { %2431 = vmatmul.mubr.f32.gmra.mrb[22].mxu0 %v1158_v27 }
 0x437   :  { %2433 = vmatprep.mubr.f32.mxu0 %v1159_v11  ;;  %2801 = vmatpush3.bf16.msra.mxu0 %v2798_v26 }
 0x438   :  { %2803 = vmatprep.subr.bf16.mxu0 %v2802_v24 }
 0x43a   :  { %2434 = vmatmul.mubr.f32.gmra.mrb[24].mxu0 %v1160_v34 }
 0x43b   :  { %2805 = vmatpush3.bf16.msra.mxu0 %v2802_v24  ;;  %2468 = vmatprep.mubr.f32.mxu0 %v1412_v28 }
 0x43c   :  { %2807 = vmatprep.subr.bf16.mxu0 %v2806_v35 }
 0x43f   :  { %2809 = vmatpush3.bf16.msra.mxu0 %v2806_v35 }
 0x440   :  { %2811 = vmatprep.subr.bf16.mxu0 %v2810_v63 }
 0x443   :  { %2813 = vmatpush3.bf16.msra.mxu0 %v2810_v63 }
 0x444   :  { %2815 = vmatprep.subr.bf16.mxu0 %v2814_v38 }
 0x447   :  { %2817 = vmatpush3.bf16.msra.mxu0 %v2814_v38 }
 0x448   :  { %2819 = vmatprep.subr.bf16.mxu0 %v2818_v42 }
 0x44b   :  { %2821 = vmatpush3.bf16.msra.mxu0 %v2818_v42 }
 0x44e   :  { %2469 = vmatmul.mubr.f32.vlgmr.msra.gmra.mrb[18].mxu0 %v1413_v32 }
 0x44f   :  { %2471 = vmatprep.mubr.f32.mxu0 %v1414_v15 }
 0x452   :  { %2472 = vmatmul.mubr.f32.gmra.mrb[20].mxu0 %v1415_v17 }
 0x453   :  { %2474 = vmatprep.mubr.f32.mxu0 %v1416_v4 }
 0x456   :  { %2475 = vmatmul.mubr.f32.gmra.mrb[22].mxu0 %v1417_v44 }
 0x457   :  { %2477 = vmatprep.mubr.f32.mxu0 %v1418_v46 }
 0x45a   :  { %2478 = vmatmul.mubr.f32.gmra.mrb[24].mxu0 %v1419_v48 }
 0x521   :  { %v2470_v56 = vpop.f32.mrb[18].mxu0 }
 0x522   :  { %v1503_v50 = vpop.f32.mrb[19].mxu0  ;;  %v1558_v61 = vadd.f32 %v2470_v56, %v1900_v36 }
 0x523   :  { %v1557_v1 = vadd.f32 %v1900_v36, %v1503_v50  ;;  %v1565_v50 = vld [vmem:[%s3913_s10] sm:$0x1] }
 0x525   :  { %v2473_v54 = vpop.f32.mrb[20].mxu0  ;;  %v1567_v2 = vadd.f32 %v1558_v61, %v1557_v1 }
 0x526   :  { %v1513_v33 = vpop.f32.mrb[21].mxu0  ;;  %v1560_v5 = vadd.f32 %v2473_v54, %v1900_v36 }
 0x527   :  { %v1559_v3 = vadd.f32 %v1900_v36, %v1513_v33  ;;  %v1901_v33 = vld [vmem:[%s3914_s11] ss:$0 sm:$0xff] }
 0x529   :  { %v1568_v55 = vadd.f32 %v1567_v2, %v1559_v3  ;;  %v2476_v13 = vpop.f32.mrb[22].mxu0 }
 0x52a   :  { %v1523_v14 = vpop.f32.mrb[23].mxu0  ;;  %v1562_v40 = vadd.f32 %v2476_v13, %v1900_v36 }
 0x52b   :  { %v1561_v8 = vadd.f32 %v1900_v36, %v1523_v14  ;;  %v1569_v16 = vadd.f32 %v1568_v55, %v1560_v5 }
 0x52d   :  { %v1570_v19 = vadd.f32 %v1569_v16, %v1561_v8  ;;  %v2479_v21 = vpop.f32.mrb[24].mxu0 }
 0x52e   :  { %v1533_v41 = vpop.f32.mrb[25].mxu0  ;;  %v1564_v18 = vadd.f32 %v2479_v21, %v1900_v36 }
 0x52f   :  { %v1563_v53 = vadd.f32 %v1900_v36, %v1533_v41  ;;  %v1571_v23 = vadd.f32 %v1570_v19, %v1562_v40 }
 0x531   :  { %v1572_v10 = vadd.f32 %v1571_v23, %v1563_v53 }
 0x533   :  { %v1573_v25 = vadd.f32 %v1572_v10, %v1564_v18 }
 0x535   :  { %v1574_v26 = vrot.slane %v1573_v25, 4 }
 0x537   :  { %v1575_v22 = vadd.f32 %v1574_v26, %v1573_v25 }
 0x539   :  { %v1576_v20 = vrot.slane %v1575_v22, 2 }
 0x53b   :  { %v1577_v58 = vadd.f32 %v1576_v20, %v1575_v22 }
 0x53d   :  { %v1578_v29 = vrot.slane %v1577_v58, 1 }
 0x53f   :  { %v1579_v24 = vadd.f32 %v1578_v29, %v1577_v58 }
 0x541   :  { %2513 = vmatmul.mubr.f32.vlgmr.msra.gmra.mrb[42].mxu1 %v1579_v24 }
 0x542   :  { %2848 = vmatpush3.bf16.msra.mxu1 %v3538_v57  ;;  %2547 = vmatprep.mubr.msk.f32.mxu1 %vm2896_vm3, %v3672_v51 }
 0x543   :  { %2849 = vmatprep.subr.bf16.mxu1 %v2895_v31 }
 0x546   :  { %2851 = vmatpush3.bf16.msra.mxu1 %v3552_v59 }
 0x547   :  { %2852 = vmatprep.subr.bf16.mxu1 %v2895_v31 }
 0x54a   :  { %2854 = vmatpush3.bf16.msra.mxu1 %v3564_v37 }
 0x54b   :  { %2855 = vmatprep.subr.bf16.mxu1 %v2895_v31 }
 0x54e   :  { %2857 = vmatpush3.bf16.msra.mxu1 %v3576_v43 }
 0x54f   :  { %2858 = vmatprep.subr.bf16.mxu1 %v2895_v31 }
 0x552   :  { %2860 = vmatpush3.bf16.msra.mxu1 %v3588_v45 }
 0x553   :  { %2861 = vmatprep.subr.bf16.mxu1 %v2895_v31 }
 0x556   :  { %2863 = vmatpush3.bf16.msra.mxu1 %v3600_v49 }
 0x557   :  { %2864 = vmatprep.subr.bf16.mxu1 %v2895_v31 }
 0x55a   :  { %2866 = vmatpush3.bf16.msra.mxu1 %v3612_v60 }
 0x55b   :  { %2867 = vmatprep.subr.bf16.mxu1 %v2895_v31 }
 0x55e   :  { %2869 = vmatpush3.bf16.msra.mxu1 %v3624_v62 }
 0x614   :  { %v1646_v57 = vpop.f32.mrb[42].mxu1 }
 0x615   :  { %v1653_v59 = vrot.slane %v1646_v57, %v3636_v52  ;;  %v2514_v37 = vpop.f32.mrb[43].mxu1 }
 0x617   :  { %v1654_v43 = vsub.f32 %v1557_v1, %v1653_v59  ;;  %v1655_v51 = vsub.f32 %v1558_v61, %v1653_v59  ;;  %v1656_v27 = vsub.f32 %v1559_v3, %v1653_v59  ;;  %v1657_v45 = vsub.f32 %v1560_v5, %v1653_v59 }
 0x618   :  { %v1658_v11 = vsub.f32 %v1561_v8, %v1653_v59  ;;  %v1659_v34 = vsub.f32 %v1562_v40, %v1653_v59  ;;  %v1660_v6 = vsub.f32 %v1563_v53, %v1653_v59  ;;  %v1661_v62 = vsub.f32 %v1564_v18, %v1653_v59 }
 0x619   :  { %v1662_v0 = vmul.f32 %v1654_v43, %v1654_v43  ;;  %v1663_v30 = vmul.f32 %v1655_v51, %v1655_v51  ;;  %v1664_v49 = vmul.f32 %v1656_v27, %v1656_v27  ;;  %v1665_v47 = vmul.f32 %v1657_v45, %v1657_v45 }
 0x61a   :  { %v1666_v31 = vmul.f32 %v1658_v11, %v1658_v11  ;;  %v1667_v63 = vmul.f32 %v1659_v34, %v1659_v34  ;;  %v1668_v7 = vmul.f32 %v1660_v6, %v1660_v6  ;;  %v1669_v12 = vmul.f32 %v1661_v62, %v1661_v62 }
 0x61b   :  { %v1670_v35 = vadd.f32 %v1663_v30, %v1662_v0 }
 0x61d   :  { %v1671_v60 = vadd.f32 %v1670_v35, %v1664_v49 }
 0x61f   :  { %v1672_v28 = vadd.f32 %v1671_v60, %v1665_v47 }
 0x621   :  { %v1673_v9 = vadd.f32 %v1672_v28, %v1666_v31 }
 0x623   :  { %v1674_v38 = vadd.f32 %v1673_v9, %v1667_v63 }
 0x625   :  { %v1675_v39 = vadd.f32 %v1674_v38, %v1668_v7 }
 0x627   :  { %v1676_v42 = vadd.f32 %v1675_v39, %v1669_v12 }
 0x629   :  { %v1677_v32 = vrot.slane %v1676_v42, 4 }
 0x62b   :  { %v1678_v15 = vadd.f32 %v1677_v32, %v1676_v42 }
 0x62d   :  { %v1679_v17 = vrot.slane %v1678_v15, 2 }
 0x62f   :  { %v1680_v4 = vadd.f32 %v1679_v17, %v1678_v15 }
 0x631   :  { %v1681_v44 = vrot.slane %v1680_v4, 1 }
 0x633   :  { %v1682_v46 = vadd.f32 %v1681_v44, %v1680_v4 }
 0x635   :  { %2548 = vmatmul.mubr.f32.vlgmr.msra.gmra.mrb[44].mxu1 %v1682_v46 }
 0x708   :  { %v1749_v48 = vpop.f32.mrb[44].mxu1 }
 0x709   :  { %v1750_v36 = vadd.f32 1e-05, %v1749_v48  ;;  %v2549_v56 = vpop.f32.mrb[45].mxu1 }
 0x70b   :  { %2891 = vrsqrt.f32 %v1750_v36 }
 0x715   :  { %v2892_v61 = vpop.eup %2891 }
 0x716   :  { %v1754_v1 = vmul.f32 %v2892_v61, %v1565_v50 }
 0x718   :  { %v1758_v54 = vrot.slane %v1754_v1, %v3636_v52 }
 0x71a   :  { %v1759_v2 = vmul.f32 %v1758_v54, %v1654_v43  ;;  %v1760_v3 = vmul.f32 %v1758_v54, %v1655_v51  ;;  %v1761_v5 = vmul.f32 %v1758_v54, %v1656_v27  ;;  %v1762_v55 = vmul.f32 %v1758_v54, %v1657_v45 }
 0x71b   :  { %v1763_v13 = vmul.f32 %v1758_v54, %v1658_v11  ;;  %v1764_v14 = vmul.f32 %v1758_v54, %v1659_v34  ;;  %v1765_v8 = vmul.f32 %v1758_v54, %v1660_v6  ;;  %v1766_v16 = vmul.f32 %v1758_v54, %v1661_v62 }
 0x71c   :  { %v1773_v40 = vadd.f32 %v1901_v33, %v1759_v2  ;;  %v1774_v19 = vadd.f32 %v1901_v33, %v1760_v3  ;;  %v1775_v21 = vadd.f32 %v1901_v33, %v1761_v5  ;;  %v1776_v41 = vadd.f32 %v1901_v33, %v1762_v55 }
 0x71d   :  { %v1777_v53 = vadd.f32 %v1901_v33, %v1763_v13  ;;  %v1778_v23 = vadd.f32 %v1901_v33, %v1764_v14  ;;  %v1779_v18 = vadd.f32 %v1901_v33, %v1765_v8  ;;  %v1780_v52 = vadd.f32 %v1901_v33, %v1766_v16 }
 0x71e   :  { %v1781_v10 = vmax.f32 %v1773_v40, 0.0  ;;  %v1782_v25 = vmax.f32 %v1774_v19, 0.0  ;;  %v1783_v26 = vmax.f32 %v1775_v21, 0.0  ;;  %v1784_v22 = vmax.f32 %v1776_v41, 0.0 }
 0x71f   :  { %v1785_v20 = vmax.f32 %v1777_v53, 0.0  ;;  %v1786_v58 = vmax.f32 %v1778_v23, 0.0  ;;  %v1787_v29 = vmax.f32 %v1779_v18, 0.0  ;;  %v1788_v24 = vmax.f32 %v1780_v52, 0.0 }
 0x720   :  { %1789 = vst [vmem:[%s3915_s13] sm:$0xff] %v1781_v10  ;;  %1790 = vst [vmem:[%s3915_s13 + $0x8] sm:$0xff] %v1782_v25 }
 0x721   :  { %1791 = vst [vmem:[%s3915_s13 + $0x10] sm:$0xff] %v1783_v26  ;;  %1792 = vst [vmem:[%s3915_s13 + $0x18] sm:$0xff] %v1784_v22 }
 0x722   :  { %1793 = vst [vmem:[%s3915_s13 + $0x20] sm:$0xff] %v1785_v20  ;;  %1794 = vst [vmem:[%s3915_s13 + $0x28] sm:$0xff] %v1786_v58 }
 0x723   :  { %1795 = vst [vmem:[%s3915_s13 + $0x30] sm:$0xff] %v1787_v29  ;;  %1796 = vst [vmem:[%s3915_s13 + $0x38] sm:$0xff] %v1788_v24 }

</bundles_post_ra>
